<compile_context>
chip_gen: v5e
topology: v5e:2x2
jax: 0.10.0
libtpu: 0.0.40
codegen_flags: <defaults>
</compile_context>

<pallas_src>
import functools

import jax
import jax.numpy as jnp
from jax.experimental import pallas as pl
from jax.experimental.pallas import tpu as pltpu


OUT_PAD = 128   # padded width of the concatenated head outputs (lane-dense)
EXTRA_W = 128   # width of the packed "extras" output slab (lane-dense)


def _round_up(x, m):
    return (x + m - 1) // m * m


def _orthogonal(key, out_dim, in_dim, gain=1.0):
    """Deterministic stand-in for nn.init.orthogonal_ on a [out, in] weight."""
    n = max(out_dim, in_dim)
    a = jax.random.normal(key, (n, n), jnp.float32)
    q, r = jnp.linalg.qr(a)
    q = q * jnp.sign(jnp.diag(r))[None, :]
    return (gain * q[:out_dim, :in_dim]).astype(jnp.float32)


def make_policy_params(key, hidden, dim_actions, dim_actions_option=2):
    """Builds all head weights as one lane-padded W_all [H, 128], b_all [1, 128].

    Real column order (first `out_real` columns):
      option(Ao) | goal(A) | vln(A) | critic_goal(1) | critic_option(1) |
      uncertainty(2) | critic_vln(1)
    Remaining columns are zero padding so the matmul output fills full vregs.
    """
    ks = jax.random.split(key, 7)
    A, Ao = dim_actions, dim_actions_option
    # CategoricalNet: orthogonal init gain 0.01, bias 0.
    w_opt = _orthogonal(ks[0], Ao, hidden, gain=0.01)
    w_goal = _orthogonal(ks[1], A, hidden, gain=0.01)
    w_vln = _orthogonal(ks[2], A, hidden, gain=0.01)
    # CriticHead / CriticHead2: orthogonal gain 1, bias 0.
    w_cg = _orthogonal(ks[3], 1, hidden)
    w_co = _orthogonal(ks[4], 1, hidden)
    w_unc = _orthogonal(ks[5], 2, hidden)
    w_cv = _orthogonal(ks[6], 1, hidden)

    # torch Linear computes x @ W.T + b; stack transposed weights column-wise.
    w_real = jnp.concatenate(
        [w.T for w in (w_opt, w_goal, w_vln, w_cg, w_co, w_unc, w_cv)], axis=1
    )  # [H, out_real]
    out_real = w_real.shape[1]
    assert out_real <= OUT_PAD
    w_all = jnp.zeros((hidden, OUT_PAD), jnp.float32).at[:, :out_real].set(w_real)
    b_all = jnp.zeros((1, OUT_PAD), jnp.float32)
    return w_all, b_all, out_real


def _policy_heads_kernel(
    feat_ref, w_ref, b_ref,          # inputs
    z_ref, extra_ref,                # lane-dense output slabs
    *, dim_actions, dim_actions_option,
):
    A, Ao = dim_actions, dim_actions_option

    # Hot path: one MXU matmul covering every linear head
    # (bf16 inputs, f32 accumulation).
    z = jnp.dot(feat_ref[...], w_ref[...], preferred_element_type=jnp.float32)
    z = z + b_ref[...]                               # [Bt, OUT_PAD] f32
    z_ref[...] = z                                   # unmasked lane-dense store

    # --- goal head epilogue of act(deterministic=True): f32 VPU/EUP work ---
    goal = z[:, Ao:Ao + A]                           # [Bt, A]
    m = jnp.max(goal, axis=-1, keepdims=True)
    e = jnp.exp(goal - m)
    s = jnp.sum(e, axis=-1, keepdims=True)
    probs = e * pl.reciprocal(s, approx=True)        # softmax (EUP vrcp)
    log_s = jnp.log(s)
    logp = (goal - m) - log_s                        # log-softmax

    # deterministic action = distribution.mode() = argmax(logits)
    action_f = jnp.argmax(goal, axis=-1).astype(jnp.float32)[:, None]  # exact int-valued f32
    # log_prob(mode) = (goal_max - m) - log(s) = -log(s)   (since m == goal_max)
    alp = -log_s                                     # [Bt, 1]
    value = z[:, Ao + 2 * A:Ao + 2 * A + 1]          # critic_goal(features)
    ent = -jnp.sum(probs * logp, axis=-1, keepdims=True)   # per-row entropy

    # Pack everything into one lane-dense slab; unpacked in the wrapper.
    extra_ref[...] = jnp.zeros_like(extra_ref)
    extra_ref[:, 0:A] = probs
    extra_ref[:, A:A + 1] = alp
    extra_ref[:, A + 1:A + 2] = value
    extra_ref[:, A + 2:A + 3] = action_f
    extra_ref[:, A + 3:A + 4] = ent


def policy_heads(features, w_all, b_all, dim_actions, dim_actions_option=2,
                 out_real=None, block_b=128):
    """features [B, H] f32 -> (logits, goal probs, action, log-prob, value, mean entropy)."""
    B, H = features.shape
    A, Ao = dim_actions, dim_actions_option
    out_pad = w_all.shape[1]
    if out_real is None:
        out_real = Ao + 2 * A + 5

    # Batch tiling: rows tiled across the grid, W / bias stay VMEM-resident.
    bt = min(block_b, _round_up(B, 8))
    Bp = _round_up(B, bt)
    nb = Bp // bt

    feat = features.astype(jnp.bfloat16)             # bf16 MXU inputs
    if Bp != B:
        feat = jnp.pad(feat, ((0, Bp - B), (0, 0)))
    w_bf = w_all.astype(jnp.bfloat16)

    kernel = functools.partial(
        _policy_heads_kernel,
        dim_actions=A, dim_actions_option=Ao,
    )

    # Explicit VMEM budget (double-buffered tiles + resident weights + margin),
    # sized so it also fits v7x's 64 MiB VMEM.
    vmem_bytes = (2 * bt * H * 2            # feature tiles (bf16)
                  + 2 * bt * out_pad * 4    # logits slab tiles
                  + 2 * bt * EXTRA_W * 4    # extras slab tiles
                  + H * out_pad * 2         # resident W (bf16)
                  + out_pad * 4)            # bias
    vmem_limit = int(min(max(4 * vmem_bytes, 4 << 20), 48 << 20))

    z_pad, extra = pl.pallas_call(
        kernel,
        out_shape=(
            jax.ShapeDtypeStruct((Bp, out_pad), jnp.float32),
            jax.ShapeDtypeStruct((Bp, EXTRA_W), jnp.float32),
        ),
        grid_spec=pltpu.PrefetchScalarGridSpec(
            num_scalar_prefetch=0,
            grid=(nb,),
            in_specs=[
                pl.BlockSpec((bt, H), lambda i: (i, 0)),          # features tile
                pl.BlockSpec((H, out_pad), lambda i: (0, 0)),     # W (resident)
                pl.BlockSpec((1, out_pad), lambda i: (0, 0)),     # bias (resident)
            ],
            out_specs=[
                pl.BlockSpec((bt, out_pad), lambda i: (i, 0)),    # logits slab
                pl.BlockSpec((bt, EXTRA_W), lambda i: (i, 0)),    # extras slab
            ],
        ),
        compiler_params=pltpu.CompilerParams(
            dimension_semantics=("parallel",),
            vmem_limit_bytes=vmem_limit,
        ),
    )(feat, w_bf, b_all)

    # Unpack the lane-dense slabs in plain JAX.
    logits_all = z_pad[:B, :out_real]
    probs = extra[:B, :A]
    alp = extra[:B, A:A + 1]
    value = extra[:B, A + 1:A + 2]
    action = extra[:B, A + 2].astype(jnp.int32)[:, None]
    entropy_mean = jnp.mean(extra[:B, A + 3])
    return logits_all, probs, action, alp, value, entropy_mean


if __name__ == "__main__":
    # SAVi-scale-ish head stack: hidden_size=128 (module default), 4 actions.
    B, H = 256, 128        # batch of env steps, net.output_size
    A, Ao = 4, 2           # dim_actions, dim_actions_option

    key = jax.random.PRNGKey(0)
    k_feat, k_param = jax.random.split(key)
    features = jax.random.normal(k_feat, (B, H), jnp.float32)
    w_all, b_all, out_real = make_policy_params(k_param, H, A, Ao)

    outs = policy_heads(features, w_all, b_all, A, Ao, out_real=out_real)
    outs = jax.block_until_ready(outs)
    logits_all, probs_goal, action, action_log_probs, value, entropy_mean = outs

    # Pure-JAX reference with the same bf16 matmul inputs.
    f_bf = features.astype(jnp.bfloat16)
    w_bf = w_all.astype(jnp.bfloat16)
    ref_z = (jnp.dot(f_bf, w_bf, preferred_element_type=jnp.float32)
             + b_all)[:, :out_real]
    ref_goal = ref_z[:, Ao:Ao + A]
    ref_probs = jax.nn.softmax(ref_goal, axis=-1)
    ref_logp = jax.nn.log_softmax(ref_goal, axis=-1)
    ref_action = jnp.argmax(ref_goal, axis=-1)
    ref_alp = jnp.take_along_axis(ref_logp, ref_action[:, None], axis=-1)
    ref_value = ref_z[:, Ao + 2 * A:Ao + 2 * A + 1]
    ref_ent = jnp.mean(-jnp.sum(ref_probs * ref_logp, axis=-1))

    assert jnp.allclose(logits_all, ref_z, atol=1e-2), "logits mismatch"
    assert jnp.allclose(probs_goal, ref_probs, atol=1e-2), "probs mismatch"
    assert jnp.all(action[:, 0] == ref_action), "action mismatch"
    assert jnp.allclose(action_log_probs, ref_alp, atol=1e-2), "log-prob mismatch"
    assert jnp.allclose(value, ref_value, atol=1e-2), "value mismatch"
    assert jnp.allclose(entropy_mean, ref_ent, atol=1e-2), "entropy mismatch"

    print("KERNEL_OK")
</pallas_src>

<mosaic_0001>
module attributes {stable_mosaic.version = 11 : i64} {
  func.func @_policy_heads_kernel(%arg0: i32, %arg1: memref<128x128xbf16, #tpu.memory_space<vmem>>, %arg2: memref<128x128xbf16, #tpu.memory_space<vmem>>, %arg3: memref<1x128xf32, #tpu.memory_space<vmem>>, %arg4: memref<128x128xf32, #tpu.memory_space<vmem>>, %arg5: memref<128x128xf32, #tpu.memory_space<vmem>>) attributes {dimension_semantics = [#tpu.dimension_semantics<parallel>], iteration_bounds = array<i64: 2>, scalar_prefetch = 0 : i64, scratch_operands = 0 : i64, tpu.core_type = #tpu.core_type<tc>, window_params = [{transform_indices = @transform_0, window_bounds = array<i64: 128, 128>}, {pipeline_mode = #tpu.pipeline_mode<synchronous>, transform_indices = @transform_1, window_bounds = array<i64: 128, 128>}, {pipeline_mode = #tpu.pipeline_mode<synchronous>, transform_indices = @transform_2, window_bounds = array<i64: 1, 128>}, {transform_indices = @transform_3, window_bounds = array<i64: 128, 128>}, {transform_indices = @transform_4, window_bounds = array<i64: 128, 128>}]} {
    %c0 = arith.constant 0 : index
    %c0_0 = arith.constant 0 : index
    %0 = vector.load %arg1[%c0, %c0_0] : memref<128x128xbf16, #tpu.memory_space<vmem>>, vector<128x128xbf16>
    %c0_1 = arith.constant 0 : index
    %c0_2 = arith.constant 0 : index
    %1 = vector.load %arg2[%c0_1, %c0_2] : memref<128x128xbf16, #tpu.memory_space<vmem>>, vector<128x128xbf16>
    %cst = arith.constant dense<0.000000e+00> : vector<128x128xf32>
    %2 = tpu.matmul %0, %1, %cst {dimension_numbers = #tpu.dot_dimension_numbers<[1], [0], [0], [1], [0, 0, 1, 1], [], []>} : vector<128x128xbf16>, vector<128x128xbf16>, vector<128x128xf32> -> vector<128x128xf32>
    %c0_3 = arith.constant 0 : index
    %c0_4 = arith.constant 0 : index
    %3 = vector.load %arg3[%c0_3, %c0_4] : memref<1x128xf32, #tpu.memory_space<vmem>>, vector<1x128xf32>
    %4 = vector.broadcast %3 : vector<1x128xf32> to vector<128x128xf32>
    %5 = arith.addf %2, %4 : vector<128x128xf32>
    %c0_5 = arith.constant 0 : index
    %c0_6 = arith.constant 0 : index
    %6 = vector.load %arg4[%c0_5, %c0_6] : memref<128x128xf32, #tpu.memory_space<vmem>>, vector<128x128xf32>
    tpu.vector_store %arg4[%c0_5, %c0_6], %5 {strides = array<i32>} : memref<128x128xf32, #tpu.memory_space<vmem>>, vector<128x128xf32>,
    %7 = vector.extract_strided_slice %5 {offsets = [0, 2], sizes = [128, 4], strides = [1, 1]} : vector<128x128xf32> to vector<128x4xf32>
    %cst_7 = arith.constant dense<0xFF800000> : vector<128xf32>
    %8 = vector.multi_reduction <maximumf>, %7, %cst_7 [1] : vector<128x4xf32> to vector<128xf32>
    %9 = vector.shape_cast %8 : vector<128xf32> to vector<128x1xf32>
    %10 = vector.broadcast %9 : vector<128x1xf32> to vector<128x4xf32>
    %11 = arith.subf %7, %10 : vector<128x4xf32>
    %12 = math.exp %11 : vector<128x4xf32>
    %cst_8 = arith.constant dense<0.000000e+00> : vector<128xf32>
    %13 = vector.multi_reduction <add>, %12, %cst_8 [1] : vector<128x4xf32> to vector<128xf32>
    %14 = vector.shape_cast %13 : vector<128xf32> to vector<128x1xf32>
    %15 = tpu.reciprocal %14 {approx = true} : vector<128x1xf32> -> vector<128x1xf32>
    %16 = vector.broadcast %15 : vector<128x1xf32> to vector<128x4xf32>
    %17 = arith.mulf %12, %16 : vector<128x4xf32>
    %18 = math.log %14 : vector<128x1xf32>
    %19 = vector.broadcast %9 : vector<128x1xf32> to vector<128x4xf32>
    %20 = arith.subf %7, %19 : vector<128x4xf32>
    %21 = vector.broadcast %18 : vector<128x1xf32> to vector<128x4xf32>
    %22 = arith.subf %20, %21 : vector<128x4xf32>
    %23 = tpu.reduce_index %7 {axis = 1 : i32, kind = #tpu.reduction_kind<arg_max>} : vector<128x4xf32> -> vector<128xi32>
    %24 = arith.sitofp %23 : vector<128xi32> to vector<128xf32>
    %25 = vector.shape_cast %24 : vector<128xf32> to vector<128x1xf32>
    %cst_9 = arith.constant 0.000000e+00 : f32
    %26 = vector.broadcast %cst_9 : f32 to vector<128x1xf32>
    %27 = arith.subf %26, %18 : vector<128x1xf32>
    %28 = vector.extract_strided_slice %5 {offsets = [0, 10], sizes = [128, 1], strides = [1, 1]} : vector<128x128xf32> to vector<128x1xf32>
    %29 = arith.mulf %17, %22 : vector<128x4xf32>
    %cst_10 = arith.constant dense<0.000000e+00> : vector<128xf32>
    %30 = vector.multi_reduction <add>, %29, %cst_10 [1] : vector<128x4xf32> to vector<128xf32>
    %31 = vector.shape_cast %30 : vector<128xf32> to vector<128x1xf32>
    %cst_11 = arith.constant 0.000000e+00 : f32
    %32 = vector.broadcast %cst_11 : f32 to vector<128x1xf32>
    %33 = arith.subf %32, %31 : vector<128x1xf32>
    %cst_12 = arith.constant 0.000000e+00 : f32
    %34 = vector.broadcast %cst_12 : f32 to vector<128x128xf32>
    %c0_13 = arith.constant 0 : index
    %c0_14 = arith.constant 0 : index
    %35 = vector.load %arg5[%c0_13, %c0_14] : memref<128x128xf32, #tpu.memory_space<vmem>>, vector<128x128xf32>
    tpu.vector_store %arg5[%c0_13, %c0_14], %34 {strides = array<i32>} : memref<128x128xf32, #tpu.memory_space<vmem>>, vector<128x128xf32>,
    %c0_15 = arith.constant 0 : index
    %c0_16 = arith.constant 0 : index
    %36 = vector.load %arg5[%c0_15, %c0_16] : memref<128x128xf32, #tpu.memory_space<vmem>>, vector<128x4xf32>
    tpu.vector_store %arg5[%c0_15, %c0_16], %17 {strides = array<i32>} : memref<128x128xf32, #tpu.memory_space<vmem>>, vector<128x4xf32>,
    %c0_17 = arith.constant 0 : index
    %c4 = arith.constant 4 : index
    %37 = vector.load %arg5[%c0_17, %c4] : memref<128x128xf32, #tpu.memory_space<vmem>>, vector<128x1xf32>
    tpu.vector_store %arg5[%c0_17, %c4], %27 {strides = array<i32>} : memref<128x128xf32, #tpu.memory_space<vmem>>, vector<128x1xf32>,
    %c0_18 = arith.constant 0 : index
    %c5 = arith.constant 5 : index
    %38 = vector.load %arg5[%c0_18, %c5] : memref<128x128xf32, #tpu.memory_space<vmem>>, vector<128x1xf32>
    tpu.vector_store %arg5[%c0_18, %c5], %28 {strides = array<i32>} : memref<128x128xf32, #tpu.memory_space<vmem>>, vector<128x1xf32>,
    %c0_19 = arith.constant 0 : index
    %c6 = arith.constant 6 : index
    %39 = vector.load %arg5[%c0_19, %c6] : memref<128x128xf32, #tpu.memory_space<vmem>>, vector<128x1xf32>
    tpu.vector_store %arg5[%c0_19, %c6], %25 {strides = array<i32>} : memref<128x128xf32, #tpu.memory_space<vmem>>, vector<128x1xf32>,
    %c0_20 = arith.constant 0 : index
    %c7 = arith.constant 7 : index
    %40 = vector.load %arg5[%c0_20, %c7] : memref<128x128xf32, #tpu.memory_space<vmem>>, vector<128x1xf32>
    tpu.vector_store %arg5[%c0_20, %c7], %33 {strides = array<i32>} : memref<128x128xf32, #tpu.memory_space<vmem>>, vector<128x1xf32>,
    return
  }
  func.func @transform_0(%arg0: i32) -> (i32, i32) {
    %c0_i32 = arith.constant 0 : i32
    %c0_i32_0 = arith.constant 0 : i32
    return %arg0, %c0_i32 : i32, i32
  }
  func.func @transform_1(%arg0: i32) -> (i32, i32) {
    %c0_i32 = arith.constant 0 : i32
    %c0_i32_0 = arith.constant 0 : i32
    %c0_i32_1 = arith.constant 0 : i32
    return %c0_i32, %c0_i32_0 : i32, i32
  }
  func.func @transform_2(%arg0: i32) -> (i32, i32) {
    %c0_i32 = arith.constant 0 : i32
    %c0_i32_0 = arith.constant 0 : i32
    %c0_i32_1 = arith.constant 0 : i32
    return %c0_i32, %c0_i32_0 : i32, i32
  }
  func.func @transform_3(%arg0: i32) -> (i32, i32) {
    %c0_i32 = arith.constant 0 : i32
    %c0_i32_0 = arith.constant 0 : i32
    return %arg0, %c0_i32 : i32, i32
  }
  func.func @transform_4(%arg0: i32) -> (i32, i32) {
    %c0_i32 = arith.constant 0 : i32
    %c0_i32_0 = arith.constant 0 : i32
    return %arg0, %c0_i32 : i32, i32
  }
}

</mosaic_0001>

<bundles_post_ra>
// kernel: tpu_custom_call.1
= control target key start
LH: loop header
LB: loop body
LE: loop exit
PB: predicated region body
PF: predicated region fallthrough
CT: control target
= control target key end

     0   :  { %10 = vsyncpa [#allocation3], 0  ;;  %s2844_s0 = inlined_call_operand.hbm [shape: bf16[256,128], index: 0, kind: input, shape index: {}]   ;;  %s2845_s1 = inlined_call_operand.hbm [shape: bf16[128,128], index: 1, kind: input, shape index: {}]   ;;  %s2846_s2 = inlined_call_operand.vmem [shape: f32[1,128], index: 2, kind: input, shape index: {}]   ;;  %s2847_s3 = inlined_call_operand.hbm [shape: f32[256,128], index: 3, kind: output, shape index: {0}]   ;;  %s2848_s4 = inlined_call_operand.hbm [shape: f32[256,128], index: 4, kind: output, shape index: {1}]  }
   0x1   :  { %12 = vsyncpa [#allocation3 + $0x1], 0 }
   0x2   :  { %13 = vsyncpa [#allocation6], 0 }
   0x3   :  { %14 = vsyncpa [#allocation4], 0 }
   0x4   :  { %16 = vsyncpa [#allocation4 + $0x1], 0 }
   0x5   :  { %17 = vsyncpa [#allocation9], 0 }
   0x6   :  { %19 = vsyncpa [#allocation9 + $0x1], 0  ;;  %s1881_s15 = smov 0   ;;  %s1883_s16 = smov 0  }
   0x7   :  { %s1885_s17 = smov 0   ;;  %s1887_s18 = smov 0  }
   0x8 LB: > { %s1902_s19 = sadd.s32 4294967295, %s1846_s18   ;;  %s1390_s20 = sadd.s32 4294967294, %s1846_s18   ;;  %s1846_s18 = sphi %s1887_s18, %s2891_s18   ;;  %s1842_s17 = sphi %s1885_s17, %s2890_s17   ;;  %s1838_s16 = sphi %s1883_s16, %s2889_s16   ;;  %s1834_s15 = sphi %s1881_s15, %s2888_s15  }
   0x9   : > { %p45_p0 = scmp.ne.s32.totalorder %s1838_s16, %s1834_s15  ;;  %p46_p1 = scmp.eq.s32.totalorder %s1902_s19, 0 }
   0xa   : > { %p111_p2 = scmp.eq.s32.totalorder %s1902_s19, 1  ;;  %p117_p3 = scmp.eq.s32.totalorder %s1390_s20, 1 }
   0xb   : > { %p1911_p4 = por %p46_p1, %p45_p0  ;;  %p1391_p5 = scmp.ge.s32.totalorder %s1846_s18, 1 }
   0xc   : > { %p1916_p6 = por %p117_p3, %p45_p0  ;;  %p150_p7 = scmp.lt.s32.totalorder %s1846_s18, 3 }
   0xd   : > { %s161_s25 = sshll.u32 %s2845_s1, 4  ;;  %s1848_s27 = smov [#allocation5]   ;;  %s162_s25 = int_to_ptr.hbm [resolvable:$true] %s161_s25 }
   0xe   : > { %p1924_p8 = pnand %p1391_p5, %p150_p7  ;;  %s163_s28 = sshll.u32 %s1848_s27, 4  ;;  %s164_s28 = int_to_ptr.vmem [resolvable:$true] %s163_s28 }
   0xf   : > { %s1934_s29 = sadd.s32 1, %s1846_s18   ;;  %s1849_s30 = smov 64  }
  0x10   : > { %p1527_p9 = pneg %p1924_p8  ;;  %s1850_s5 = smov 4  }
  0x11   : > { %s29_s6 = ssub.s32 %s1846_s18, %s1934_s29  ;;  %s32_s7 = sadd.s32 1, %s1842_s17 }
  0x12   : > { %p1528_p10 = pnand %p1527_p9, %p46_p1  ;;  %p30_p12 = scmp.eq.s32.totalorder %s29_s6, 0 }
  0x13   : > { %p39_p13 = scmp.ne.s32.totalorder %s1842_s17, %s1838_s16  ;;  %p40_p0 = scmp.eq.s32.totalorder %s1846_s18, 0 }
  0x14   : > { %1530 = dma.hbm_to_vmem [thread:$0]  (!%p1528_p10), %s162_s25, 1024, %s164_s28, [#allocation6], %s1849_s30, %s1849_s30, %s1850_s5  }
  0x15   : > { %s1946_s8 = scalar_select %p30_p12, %s1842_s17, %s32_s7  }
  0x16   : > { %p1950_p3 = por %p111_p2, %p39_p13  ;;  %p1543_p5 = scmp.lt.s32.totalorder %s1846_s18, 2 }
  0x17   : > { %s180_s10 = sand.u32 1, %s1842_s17   ;;  %s1474_s11 = sshll.u32 %s1846_s18, 6 }
  0x18   : > { %p41_p7 = por %p40_p0, %p39_p13  ;;  %s1394_s12 = sshll.u32 %s180_s10, 6 }
  0x19   : > { %s189_s20 = scalar_lea.hbm %s2844_s0, %s1474_s11  ;;  %s184_s24 = scalar_lea.vmem [#allocation2], %s1394_s12 }
  0x1a   : > { %s190_s23 = sshll.u32 %s189_s20, 4  ;;  %s192_s25 = sshll.u32 %s184_s24, 4  ;;  %s191_s23 = int_to_ptr.hbm [resolvable:$true] %s190_s23  ;;  %s193_s25 = int_to_ptr.vmem [resolvable:$true] %s192_s25 }
  0x1b   : > { %p1960_p9 = pnand %p1543_p5, %p41_p7  ;;  %s181_s28 = scalar_lea.sflag [#allocation3], %s180_s10 }
  0x1c   : > { %s1714_s6 = sshra.s32 %s191_s23, 4  ;;  %s1721_s12 = scalar_lea.hbm %s2844_s0, 128  ;;  %s1715_s6 = int_to_ptr.hbm [resolvable:$true] %s1714_s6 }
  0x1d   : > { %s1716_s7 = scalar_lea.hbm %s1715_s6, 64  ;;  %p1718_p10 = pneg %p1960_p9 }
  0x1e   : > { %p1717_p2 = scmp.ne.s32.totalorder %s1715_s6, %s1716_s7  ;;  %p1722_p0 = scmp.lt.s32.totalorder %s1715_s6, %s2844_s0 }
  0x1f   : > { %p1723_p5 = scmp.lt.s32.totalorder %s1721_s12, %s1716_s7 }
  0x20   : > { %p1719_p12 = pnand %p1718_p10, %p1717_p2 }
  0x21   : > { %p1724_p7 = por %p1723_p5, %p1722_p0 }
  0x22   : > { %p1720_p13 = pneg %p1719_p12 }
  0x24   : > { %p1725_p11 = pnand %p1724_p7, %p1720_p13 }
  0x26   : > { %1728 = shalt.err (!%p1725_p11)
}
  0x27   : > { %1534 = dma.hbm_to_vmem [thread:$0]  (!%p1960_p9), %s191_s23, 1024, %s193_s25, %s181_s28, %s1849_s30, %s1849_s30, %s1850_s5  }
  0x28   : > { %204 = sbr.rel (%p1924_p8) target bundleno = 1265 (0x4f1), region = 32 }
  0x2d   : > { %s1980_s10 = sand.u32 1, %s1838_s16  }
  0x2e   : > { %s1398_s24 = sshll.u32 %s1980_s10, 6  ;;  %s207_s6 = scalar_lea.sflag [#allocation3], %s1980_s10 }
  0x2f   : > { %s1984_s7 = scalar_lea.vmem [#allocation2], %s1398_s24 }
  0x30   : > { %1817 = dma.done.wait (%p1911_p4), %s207_s6, 1024  }
  0x31   : > { %1819 = vsyncadd (%p1911_p4), %s207_s6, 4294966272 }
  0x32   : > { %1821 = dma.done.wait (%p46_p1), [#allocation6], 1024  }
  0x33   : > { %1823 = vsyncadd (%p46_p1), [#allocation6], 4294966272  ;;  %v1490_v0 = vld [vmem:[#allocation5 + $0x38] sm:$0xff]  ;;  %v1489_v1 = vld [vmem:[#allocation5 + $0x30] sm:$0xff]  ;;  %s1400_s30 = sshll.u32 %s1980_s10, 7  ;;  %s1851_s23 = smov 126  }
  0x34   : > { %381 = vmatpush.bf16.msra.mxu0 %v1490_v0  ;;  %1493 = vmatpush.bf16.msra.mxu1 %v1490_v0  ;;  %v1488_v2 = vld [vmem:[#allocation5 + $0x28] sm:$0xff]  ;;  %v1487_v3 = vld [vmem:[#allocation5 + $0x20] sm:$0xff]  ;;  %v1486_v4 = vld [vmem:[#allocation5 + $0x18] sm:$0xff]  ;;  %s2015_s5 = scalar_lea.vmem [#allocation7], %s1400_s30  ;;  %s2851_s25 = smov 123   ;;  %vm446_vm0 = vcmask 48144  }
  0x35   : > { %1495 = vmatpush.bf16.msra.mxu3 %v1490_v0  ;;  %1494 = vmatpush.bf16.msra.mxu2 %v1490_v0  ;;  %v1485_v5 = vld [vmem:[#allocation5 + $0x10] sm:$0xff]  ;;  %v1484_v6 = vld [vmem:[#allocation5 + $0x8] sm:$0xff]  ;;  %v1483_v7 = vld [vmem:[#allocation5] sm:$0xff]  ;;  %vm607_vm1 = vcmask 31744   ;;  %s2452_s27 = scalar_lea.vmem [#allocation8], %s1400_s30  ;;  %vm1120_vm2 = vcmask 39968  }
  0x36   : > { %v1475_v8 = vld [vmem:[%s1984_s7] sm:$0xff]  ;;  %v1477_v9 = vld [vmem:[%s1984_s7 + $0x10] sm:$0xff]  ;;  %v1476_v12 = vld [vmem:[%s1984_s7 + $0x8] sm:$0xff]  ;;  %vm1185_vm3 = vcmask 48168   ;;  %vm1202_vm4 = vcmask 56368   ;;  %s1491_s28 = sshll.u32 %s1902_s19, 7 }
  0x37   : > { %v1481_v10 = vld [vmem:[%s1984_s7 + $0x30] sm:$0xff]  ;;  %v1479_v11 = vld [vmem:[%s1984_s7 + $0x20] sm:$0xff]  ;;  %v1478_v13 = vld [vmem:[%s1984_s7 + $0x18] sm:$0xff]  ;;  %s1253_s12 = scalar_lea.hbm %s2847_s3, %s1491_s28  ;;  %s1254_s14 = sshll.u32 %s2015_s5, 4  ;;  %s1255_s14 = int_to_ptr.vmem [resolvable:$true] %s1254_s14 }
  0x38   : > { %382 = vmatpush.bf16.msra.mxu0 %v1489_v1  ;;  %1496 = vmatpush.bf16.msra.mxu1 %v1489_v1  ;;  %v1480_v14 = vld [vmem:[%s1984_s7 + $0x28] sm:$0xff]  ;;  %v2004_v15 = vld [vmem:[%s2846_s2] ss:$0 sm:$0xff]  ;;  %v1482_v30 = vld [vmem:[%s1984_s7 + $0x38] sm:$0xff]  ;;  %s1256_s20 = sshll.u32 %s1253_s12, 4  ;;  %s1237_s24 = scalar_lea.sflag [#allocation4], %s1980_s10  ;;  %s1257_s20 = int_to_ptr.hbm [resolvable:$true] %s1256_s20 }
  0x39   : > { %1498 = vmatpush.bf16.msra.mxu3 %v1489_v1  ;;  %1497 = vmatpush.bf16.msra.mxu2 %v1489_v1  ;;  %s1758_s6 = sshra.s32 %s1257_s20, 4  ;;  %s1764_s30 = scalar_lea.hbm %s2847_s3, 256  ;;  %s1759_s6 = int_to_ptr.hbm [resolvable:$true] %s1758_s6 }
  0x3a   : > { %s1760_s7 = scalar_lea.hbm %s1759_s6, 128  ;;  %p1765_p11 = scmp.lt.s32.totalorder %s1759_s6, %s2847_s3 }
  0x3b   : > { %p1761_p1 = scmp.ne.s32.totalorder %s1759_s6, %s1760_s7  ;;  %p1766_p9 = scmp.lt.s32.totalorder %s1764_s30, %s1760_s7 }
  0x3c   : > { %383 = vmatpush.bf16.msra.mxu0 %v1488_v2  ;;  %1499 = vmatpush.bf16.msra.mxu1 %v1488_v2 }
  0x3d   : > { %1501 = vmatpush.bf16.msra.mxu3 %v1488_v2  ;;  %1500 = vmatpush.bf16.msra.mxu2 %v1488_v2  ;;  %p1762_p4 = pnand %p1761_p1, %p1950_p3  ;;  %p1767_p2 = por %p1766_p9, %p1765_p11 }
  0x3f   : > { %p1763_p8 = pneg %p1762_p4 }
  0x40   : > { %384 = vmatpush.bf16.msra.mxu0 %v1487_v3  ;;  %1502 = vmatpush.bf16.msra.mxu1 %v1487_v3 }
  0x41   : > { %1504 = vmatpush.bf16.msra.mxu3 %v1487_v3  ;;  %1503 = vmatpush.bf16.msra.mxu2 %v1487_v3  ;;  %p1768_p10 = pnand %p1767_p2, %p1763_p8 }
  0x44   : > { %385 = vmatpush.bf16.msra.mxu0 %v1486_v4  ;;  %1505 = vmatpush.bf16.msra.mxu1 %v1486_v4 }
  0x45   : > { %1507 = vmatpush.bf16.msra.mxu3 %v1486_v4  ;;  %1506 = vmatpush.bf16.msra.mxu2 %v1486_v4 }
  0x48   : > { %386 = vmatpush.bf16.msra.mxu0 %v1485_v5  ;;  %1508 = vmatpush.bf16.msra.mxu1 %v1485_v5 }
  0x49   : > { %1510 = vmatpush.bf16.msra.mxu3 %v1485_v5  ;;  %1509 = vmatpush.bf16.msra.mxu2 %v1485_v5 }
  0x4c   : > { %387 = vmatpush.bf16.msra.mxu0 %v1484_v6  ;;  %1511 = vmatpush.bf16.msra.mxu1 %v1484_v6 }
  0x4d   : > { %1513 = vmatpush.bf16.msra.mxu3 %v1484_v6  ;;  %1512 = vmatpush.bf16.msra.mxu2 %v1484_v6 }
  0x50   : > { %388 = vmatpush.bf16.msra.mxu0 %v1483_v7  ;;  %1514 = vmatpush.bf16.msra.mxu1 %v1483_v7 }
  0x51   : > { %1516 = vmatpush.bf16.msra.mxu3 %v1483_v7  ;;  %1515 = vmatpush.bf16.msra.mxu2 %v1483_v7 }
  0x53   : > { %389 = vmatmul.bf16.vlgmr.msra.gmra.mxu0 %v1475_v8  ;;  %399 = vmatmul.bf16.vlgmr.msra.gmra.mxu1 %v1477_v9 }
  0x54   : > { %419 = vmatmul.bf16.vlgmr.msra.gmra.mxu3 %v1481_v10  ;;  %409 = vmatmul.bf16.vlgmr.msra.gmra.mxu2 %v1479_v11 }
  0x63   : > { %394 = vmatmul.bf16.gmra.mxu0 %v1476_v12  ;;  %404 = vmatmul.bf16.gmra.mxu1 %v1478_v13 }
  0x64   : > { %414 = vmatmul.bf16.gmra.mxu2 %v1480_v14  ;;  %424 = vmatmul.bf16.gmra.mxu3 %v1482_v30 }
  0xd0   : > { %v390_v16 = vpop.f32.mrf.mxu0  ;;  %v400_v17 = vpop.f32.mrf.mxu1 }
  0xd1   : > { %v2008_v18 = vadd.f32 %v2004_v15, %v390_v16  ;;  %v2011_v19 = vadd.f32 %v2004_v15, %v400_v17 }
  0xd3   : > { %430 = vst [vmem:[%s2015_s5] sm:$0xff] %v2008_v18  ;;  %760 = vrot.lane.b32.xlu2 %v2011_v19, %s1851_s23  ;;  %752 = vrot.lane.b32.xlu0 %v2008_v18, %s1851_s23  ;;  %v459_v33 = vsel %vm446_vm0, %v2011_v19, -inf  ;;  %v447_v34 = vsel %vm446_vm0, %v2008_v18, -inf }
  0xd4   : > { %434 = vst [vmem:[%s2015_s5 + $0x20] sm:$0xff] %v2011_v19 }
  0xd7   : > { %v420_v20 = vpop.f32.mrf.mxu3  ;;  %v410_v21 = vpop.f32.mrf.mxu2 }
  0xd8   : > { %v2026_v22 = vadd.f32 %v2004_v15, %v420_v20  ;;  %v392_v23 = vpop.f32.mrf.mxu0  ;;  %v402_v24 = vpop.f32.mrf.mxu1  ;;  %v2045_v27 = vadd.f32 %v2004_v15, %v410_v21 }
  0xd9   : > { %v2029_v25 = vadd.f32 %v2004_v15, %v392_v23  ;;  %v2032_v26 = vadd.f32 %v2004_v15, %v402_v24 }
  0xda   : > { %442 = vst [vmem:[%s2015_s5 + $0x60] sm:$0xff] %v2026_v22  ;;  %776 = vrot.lane.b32.xlu1 %v2026_v22, %s1851_s23  ;;  %v483_v40 = vsel %vm446_vm0, %v2026_v22, -inf  ;;  %v471_v41 = vsel %vm446_vm0, %v2045_v27, -inf }
  0xdb   : > { %431 = vst [vmem:[%s2015_s5 + $0x8] sm:$0xff] %v2029_v25  ;;  %1137 = vrot.lane.b32.xlu2 %v2008_v18, %s2851_s25  ;;  %1145 = vrot.lane.b32.xlu0 %v2011_v19, %s2851_s25  ;;  %v462_v58 = vsel %vm446_vm0, %v2032_v26, -inf  ;;  %v450_v59 = vsel %vm446_vm0, %v2029_v25, -inf }
  0xdc   : > { %435 = vst [vmem:[%s2015_s5 + $0x28] sm:$0xff] %v2032_v26 }
  0xdd   : > { %438 = vst [vmem:[%s2015_s5 + $0x40] sm:$0xff] %v2045_v27 }
  0xdf   : > { %v412_v28 = vpop.f32.mrf.mxu2  ;;  %v422_v31 = vpop.f32.mrf.mxu3 }
  0xe0   : > { %v2052_v29 = vadd.f32 %v2004_v15, %v412_v28  ;;  %v2060_v32 = vadd.f32 %v2004_v15, %v422_v31  ;;  %v395_v35 = vpop.f32.mrf.mxu0  ;;  %v405_v37 = vpop.f32.mrf.mxu1 }
  0xe1   : > { %v2073_v36 = vadd.f32 %v2004_v15, %v395_v35  ;;  %v2078_v38 = vadd.f32 %v2004_v15, %v405_v37 }
  0xe2   : > { %1153 = vrot.lane.b32.xlu1 %v2045_v27, %s2851_s25  ;;  %439 = vst [vmem:[%s2015_s5 + $0x48] sm:$0xff] %v2052_v29  ;;  %v486_v39 = vsel %vm446_vm0, %v2060_v32, -inf  ;;  %v474_v60 = vsel %vm446_vm0, %v2052_v29, -inf }
  0xe3   : > { %443 = vst [vmem:[%s2015_s5 + $0x68] sm:$0xff] %v2060_v32  ;;  %v453_v48 = vsel %vm446_vm0, %v2073_v36, -inf  ;;  %v465_v61 = vsel %vm446_vm0, %v2078_v38, -inf }
  0xe4   : > { %432 = vst [vmem:[%s2015_s5 + $0x10] sm:$0xff] %v2073_v36 }
  0xe5   : > { %436 = vst [vmem:[%s2015_s5 + $0x30] sm:$0xff] %v2078_v38 }
  0xe7   : > { %v415_v42 = vpop.f32.mrf.mxu2  ;;  %v425_v50 = vpop.f32.mrf.mxu3 }
  0xe8   : > { %v2099_v43 = vadd.f32 %v2004_v15, %v415_v42  ;;  %v397_v44 = vpop.f32.mrf.mxu0  ;;  %v407_v46 = vpop.f32.mrf.mxu1  ;;  %v2124_v51 = vadd.f32 %v2004_v15, %v425_v50 }
  0xe9   : > { %v2106_v45 = vadd.f32 %v2004_v15, %v397_v44  ;;  %v2115_v47 = vadd.f32 %v2004_v15, %v407_v46 }
  0xea   : > { %1147 = vrot.lane.b32.xlu1 %v2032_v26, %s2851_s25  ;;  %440 = vst [vmem:[%s2015_s5 + $0x50] sm:$0xff] %v2099_v43  ;;  %v477_v49 = vsel %vm446_vm0, %v2099_v43, -inf  ;;  %v489_v8 = vsel %vm446_vm0, %v2124_v51, -inf }
  0xeb   : > { %433 = vst [vmem:[%s2015_s5 + $0x18] sm:$0xff] %v2106_v45  ;;  %v456_v52 = vsel %vm446_vm0, %v2106_v45, -inf  ;;  %v468_v57 = vsel %vm446_vm0, %v2115_v47, -inf }
  0xec   : > { %437 = vst [vmem:[%s2015_s5 + $0x38] sm:$0xff] %v2115_v47 }
  0xed   : > { %2858 = vst [vmem:[#allocation14_spill] sm:$0xff] %v2124_v51 }
  0xee   : > { %444 = vst [vmem:[%s2015_s5 + $0x70] sm:$0xff] %v2124_v51 }
  0xef   : > { %v427_v53 = vpop.f32.mrf.mxu3  ;;  %v417_v55 = vpop.f32.mrf.mxu2 }
  0xf0   : > { %v2131_v54 = vadd.f32 %v2004_v15, %v427_v53  ;;  %v2136_v56 = vadd.f32 %v2004_v15, %v417_v55 }
  0xf2   : > { %770 = vrot.lane.b32.xlu1 %v2052_v29, %s1851_s23  ;;  %2859 = vst [vmem:[#allocation15_spill] sm:$0xff] %v2131_v54 }
  0xf3   : > { %445 = vst [vmem:[%s2015_s5 + $0x78] sm:$0xff] %v2131_v54 }
  0xf4   : > { %441 = vst [vmem:[%s2015_s5 + $0x58] sm:$0xff] %v2136_v56 }
 0x104   : > { %460 = vmax.xlane.f32.xlu2 %v459_v33 }
 0x105   : > { %448 = vmax.xlane.f32.xlu0 %v447_v34 }
 0x119   : > { %768 = vrot.lane.b32.xlu0 %v2045_v27, %s1851_s23 }
 0x11c   : > { %487 = vmax.xlane.f32.xlu1 %v486_v39  ;;  %1161 = vrot.lane.b32.xlu2 %v2026_v22, %s2851_s25 }
 0x12d   : > { %v761_v2 = vpop.permute.xlu2 %760 }
 0x12e   : > { %v812_v21 = vsel %vm607_vm1, %v761_v2, -inf }
 0x135   : > { %756 = vrot.lane.b32.xlu1 %v2073_v36, %s1851_s23  ;;  %v2179_v5 = vpop.permute.xlu2 %1137 }
 0x13d   : > { %764 = vrot.lane.b32.xlu1 %v2078_v38, %s1851_s23 }
 0x143   : > { %484 = vmax.xlane.f32.xlu0 %v483_v40 }
 0x145   : > { %1141 = vrot.lane.b32.xlu1 %v2073_v36, %s2851_s25  ;;  %472 = vmax.xlane.f32.xlu2 %v471_v41  ;;  %v2158_v62 = vpop.permute.xlu0 %752 }
 0x14c   : > { %v777_v17 = vpop.permute.xlu1 %776 }
 0x14d   : > { %v2164_v63 = vpop.permute.xlu0 %1145 }
 0x154   : > { %v2207_v23 = vpop.permute.xlu1 %1153 }
 0x157   : > { %762 = vrot.lane.b32.xlu0 %v2032_v26, %s1851_s23 }
 0x15c   : > { %v2214_v31 = vpop.permute.xlu1 %1147 }
 0x15d   : > { %754 = vrot.lane.b32.xlu2 %v2029_v25, %s1851_s23 }
 0x15f   : > { %1139 = vrot.lane.b32.xlu0 %v2029_v25, %s2851_s25 }
 0x164   : > { %v771_v37 = vpop.permute.xlu1 %770 }
 0x16f   : > { %454 = vmax.xlane.f32.xlu1 %v453_v48 }
 0x177   : > { %478 = vmax.xlane.f32.xlu1 %v477_v49  ;;  %v461_v9 = vpop.xlane.xlu2 %460 }
 0x178   : > { %v449_v0 = vpop.xlane.xlu0 %448  ;;  %v2191_v13 = vsub.f32 %v2011_v19, %v461_v9 }
 0x179   : > { %v2185_v10 = vsub.f32 %v2008_v18, %v449_v0  ;;  %v492_v18 = vsel %vm446_vm0, %v2131_v54, -inf  ;;  %v827_v0 = vsel %vm607_vm1, %v771_v37, -inf }
 0x17a   : > { %v519_v15 = vmul.f32 1.442695, %v2191_v13 }
 0x17b   : > { %v511_v12 = vmul.f32 1.442695, %v2185_v10 }
 0x17d   : > { %1587 = vpow2.f32 %v511_v12 }
 0x17e   : > { %1589 = vpow2.f32 %v519_v15 }
 0x17f   : > { %457 = vmax.xlane.f32.xlu1 %v456_v52  ;;  %v2187_v11 = vpop.permute.xlu2 %1161  ;;  %v480_v52 = vsel %vm446_vm0, %v2136_v56, -inf }
 0x183   : > { %v2194_v16 = vpop.eup %1587 }
 0x184   : > { %v2202_v20 = vpop.eup %1589 }
 0x186   : > { %463 = vmax.xlane.f32.xlu2 %v462_v58 }
 0x187   : > { %469 = vmax.xlane.f32.xlu1 %v468_v57  ;;  %v800_v57 = vsel %vm607_vm1, %v2158_v62, -inf }
 0x189   : > { %451 = vmax.xlane.f32.xlu0 %v450_v59 }
 0x18b   : > { %v769_v1 = vpop.permute.xlu0 %768 }
 0x18c   : > { %v824_v4 = vsel %vm607_vm1, %v769_v1, -inf }
 0x18f   : > { %v488_v42 = vpop.xlane.xlu1 %487 }
 0x190   : > { %v2246_v59 = vsub.f32 %v2060_v32, %v488_v42 }
 0x191   : > { %475 = vmax.xlane.f32.xlu0 %v474_v60  ;;  %v836_v60 = vsel %vm607_vm1, %v777_v17, -inf }
 0x199   : > { %466 = vmax.xlane.f32.xlu0 %v465_v61  ;;  %v537_v61 = vmul.f32 1.442695, %v2246_v59 }
 0x19e   : > { %778 = vrot.lane.b32.xlu2 %v2060_v32, %s1851_s23 }
 0x1a0   : > { %782 = vrot.lane.b32.xlu1 %v2131_v54, %s1851_s23 }
 0x1a6   : > { %1155 = vrot.lane.b32.xlu2 %v2052_v29, %s2851_s25 }
 0x1a7   : > { %v757_v50 = vpop.permute.xlu1 %756 }
 0x1a8   : > { %1159 = vrot.lane.b32.xlu1 %v2136_v56, %s2851_s25 }
 0x1ad   : > { %780 = vrot.lane.b32.xlu0 %v2124_v51, %s1851_s23 }
 0x1ae   : > { %1149 = vrot.lane.b32.xlu2 %v2078_v38, %s2851_s25 }
 0x1af   : > { %v765_v62 = vpop.permute.xlu1 %764 }
 0x1b0   : > { %v818_v32 = vsel %vm607_vm1, %v765_v62, -inf }
 0x1b5   : > { %1157 = vrot.lane.b32.xlu0 %v2099_v43, %s2851_s25 }
 0x1b6   : > { %772 = vrot.lane.b32.xlu2 %v2099_v43, %s1851_s23  ;;  %v2176_v3 = vpop.xlane.xlu0 %484 }
 0x1b8   : > { %v473_v14 = vpop.xlane.xlu2 %472 }
 0x1b9   : > { %v2218_v39 = vsub.f32 %v2045_v27, %v473_v14  ;;  %v806_v27 = vsel %vm607_vm1, %v757_v50, -inf  ;;  %v2266_v14 = vpop.permute.xlu1 %1141 }
 0x1ba   : > { %2861 = vst [vmem:[#allocation17_spill] sm:$0xff] %v2266_v14 }
 0x1bb   : > { %v527_v41 = vmul.f32 1.442695, %v2218_v39 }
 0x1bd   : > { %758 = vrot.lane.b32.xlu0 %v2106_v45, %s1851_s23  ;;  %1591 = vpow2.f32 %v527_v41 }
 0x1c0   : > { %v755_v19 = vpop.permute.xlu2 %754 }
 0x1c1   : > { %v803_v30 = vsel %vm607_vm1, %v755_v19, -inf }
 0x1c3   : > { %v2229_v49 = vpop.eup %1591 }
 0x1c5   : > { %1151 = vrot.lane.b32.xlu0 %v2115_v47, %s2851_s25 }
 0x1c9   : > { %v763_v6 = vpop.permute.xlu0 %762 }
 0x1ca   : > { %v815_v7 = vsel %vm607_vm1, %v763_v6, -inf }
 0x1cd   : > { %774 = vrot.lane.b32.xlu0 %v2136_v56, %s1851_s23 }
 0x1d1   : > { %v2211_v28 = vpop.permute.xlu0 %1139 }
 0x1d2   : > { %825 = vmax.index.xlane.f32.xlu1 %v824_v4 }
 0x1da   : > { %816 = vmax.index.xlane.f32.xlu1 %v815_v7  ;;  %v2262_v7 = vsub.f32 %v2026_v22, %v2176_v3 }
 0x1dc   : > { %v535_v12 = vmul.f32 1.442695, %v2262_v7 }
 0x1df   : > { %490 = vmax.xlane.f32.xlu2 %v489_v8 }
 0x1e2   : > { %v455_v3 = vpop.xlane.xlu1 %454 }
 0x1f3   : > { %559 = vrot.lane.b32.xlu1 %v2194_v16, %s1851_s23 }
 0x1f7   : > { %766 = vrot.lane.b32.xlu2 %v2115_v47, %s1851_s23  ;;  %493 = vmax.xlane.f32.xlu0 %v492_v18 }
 0x1f9   : > { %v464_v24 = vpop.xlane.xlu2 %463 }
 0x1fa   : > { %v2224_v44 = vsub.f32 %v2032_v26, %v464_v24  ;;  %v2278_v24 = vsub.f32 %v2073_v36, %v455_v3 }
 0x1fb   : > { %567 = vrot.lane.b32.xlu1 %v2202_v20, %s1851_s23 }
 0x1fc   : > { %v452_v34 = vpop.xlane.xlu0 %451  ;;  %v521_v46 = vmul.f32 1.442695, %v2224_v44 }
 0x1fd   : > { %v2269_v17 = vsub.f32 %v2029_v25, %v452_v34  ;;  %v515_v25 = vmul.f32 1.442695, %v2278_v24 }
 0x1fe   : > { %1593 = vpow2.f32 %v521_v46 }
 0x1ff   : > { %1143 = vrot.lane.b32.xlu2 %v2106_v45, %s2851_s25  ;;  %813 = vmax.index.xlane.f32.xlu0 %v812_v21  ;;  %1595 = vpow2.f32 %v537_v61  ;;  %v513_v21 = vmul.f32 1.442695, %v2269_v17 }
 0x200   : > { %1597 = vpow2.f32 %v535_v12 }
 0x201   : > { %v779_v33 = vpop.permute.xlu2 %778  ;;  %1599 = vpow2.f32 %v513_v21 }
 0x202   : > { %v839_v35 = vsel %vm607_vm1, %v779_v33, -inf  ;;  %1601 = vpow2.f32 %v515_v25 }
 0x204   : > { %v2220_v40 = vpop.xlane.xlu0 %475  ;;  %v2236_v53 = vpop.eup %1593 }
 0x205   : > { %v2253_v2 = vpop.eup %1595 }
 0x206   : > { %v2273_v22 = vpop.eup %1597 }
 0x207   : > { %804 = vmax.index.xlane.f32.xlu0 %v803_v30  ;;  %v2283_v33 = vpop.eup %1599 }
 0x208   : > { %v2292_v42 = vpop.eup %1601 }
 0x209   : > { %v2243_v58 = vpop.permute.xlu2 %1155 }
 0x20c   : > { %v2227_v48 = vpop.xlane.xlu0 %466 }
 0x20f   : > { %840 = vmax.index.xlane.f32.xlu0 %v839_v35  ;;  %v479_v35 = vpop.xlane.xlu1 %478 }
 0x211   : > { %v2251_v1 = vpop.permute.xlu2 %1149 }
 0x212   : > { %2860 = vst [vmem:[#allocation16_spill] sm:$0xff] %v2251_v1 }
 0x217   : > { %v458_v46 = vpop.xlane.xlu1 %457 }
 0x219   : > { %v773_v4 = vpop.permute.xlu2 %772 }
 0x21a   : > { %v830_v9 = vsel %vm607_vm1, %v773_v4, -inf }
 0x21f   : > { %v781_v26 = vpop.permute.xlu0 %780 }
 0x220   : > { %v842_v55 = vsel %vm607_vm1, %v781_v26, -inf  ;;  %v470_v26 = vpop.xlane.xlu1 %469 }
 0x223   : > { %575 = vrot.lane.b32.xlu0 %v2229_v49, %s1851_s23 }
 0x225   : > { %807 = vmax.index.xlane.f32.xlu1 %v806_v27  ;;  %v2301_v27 = vsub.f32 %v2099_v43, %v479_v35 }
 0x227   : > { %v2258_v6 = vpop.permute.xlu0 %1157 }
 0x228   : > { %481 = vmax.xlane.f32.xlu2 %v480_v52  ;;  %v531_v52 = vmul.f32 1.442695, %v2301_v27 }
 0x22b   : > { %569 = vrot.lane.b32.xlu0 %v2236_v53, %s1851_s23 }
 0x22d   : > { %843 = vmax.index.xlane.f32.xlu1 %v842_v55  ;;  %v2305_v55 = vsub.f32 %v2115_v47, %v470_v26  ;;  %v2321_v47 = vsub.f32 %v2052_v29, %v2220_v40 }
 0x22f   : > { %v759_v15 = vpop.permute.xlu0 %758 }
 0x230   : > { %801 = vmax.index.xlane.f32.xlu2 %v800_v57  ;;  %v525_v57 = vmul.f32 1.442695, %v2305_v55  ;;  %v809_v43 = vsel %vm607_vm1, %v759_v15, -inf  ;;  %v2332_v15 = vsub.f32 %v2078_v38, %v2227_v48 }
 0x237   : > { %v2280_v30 = vpop.permute.xlu0 %1151 }
 0x238   : > { %837 = vmax.index.xlane.f32.xlu2 %v836_v60  ;;  %2862 = vst [vmem:[#allocation18_spill] sm:$0xff] %v2280_v30 }
 0x23f   : > { %v775_v37 = vpop.permute.xlu0 %774 }
 0x240   : > { %828 = vmax.index.xlane.f32.xlu2 %v827_v0  ;;  %v833_v36 = vsel %vm607_vm1, %v775_v37, -inf  ;;  %v783_v0 = vpop.permute.xlu1 %782 }
 0x246   : > { %585 = vrot.lane.b32.xlu1 %v2253_v2, %s1851_s23 }
 0x248   : > { %819 = vmax.index.xlane.f32.xlu2 %v818_v32 }
 0x252   : > { %v491_v8 = vpop.xlane.xlu2 %490 }
 0x253   : > { %v2288_v34 = vsub.f32 %v2124_v51, %v491_v8  ;;  %v2326_v8 = vpop.permute.xlu1 %1159 }
 0x254   : > { %2864 = vst [vmem:[#allocation20_spill] sm:$0xff] %v2326_v8 }
 0x255   : > { %831 = vmax.index.xlane.f32.xlu0 %v830_v9  ;;  %v539_v41 = vmul.f32 1.442695, %v2288_v34  ;;  %v529_v9 = vmul.f32 1.442695, %v2321_v47 }
 0x257   : > { %1603 = vpow2.f32 %v539_v41 }
 0x258   : > { %1605 = vpow2.f32 %v531_v52 }
 0x259   : > { %1607 = vpow2.f32 %v525_v57 }
 0x25a   : > { %v767_v18 = vpop.permute.xlu2 %766 }
 0x25b   : > { %v821_v19 = vsel %vm607_vm1, %v767_v18, -inf  ;;  %v2336_v29 = vpop.xlane.xlu1 %825 }
 0x25d   : > { %822 = vmax.index.xlane.f32.xlu0 %v821_v19  ;;  %v2296_v50 = vpop.eup %1603 }
 0x25e   : > { %v2308_v60 = vpop.eup %1605 }
 0x25f   : > { %v2312_v61 = vpop.eup %1607 }
 0x260   : > { %583 = vrot.lane.b32.xlu2 %v2273_v22, %s1851_s23 }
 0x262   : > { %v2317_v62 = vpop.permute.xlu2 %1143 }
 0x263   : > { %2863 = vst [vmem:[#allocation19_spill] sm:$0xff] %v2317_v62  ;;  %v2349_v38 = vpop.xlane.xlu1 %816 }
 0x268   : > { %561 = vrot.lane.b32.xlu2 %v2283_v33, %s1851_s23 }
 0x26b   : > { %v560_v25 = vpop.permute.xlu1 %559 }
 0x26c   : > { %v608_v35 = vsel %vm607_vm1, %v560_v25, 0.0  ;;  %v494_v25 = vpop.xlane.xlu0 %493 }
 0x270   : > { %834 = vmax.index.xlane.f32.xlu1 %v833_v36 }
 0x271   : > { %563 = vrot.lane.b32.xlu0 %v2292_v42, %s1851_s23 }
 0x273   : > { %v568_v41 = vpop.permute.xlu1 %567 }
 0x274   : > { %v620_v57 = vsel %vm607_vm1, %v568_v41, 0.0 }
 0x279   : > { %587 = vrot.lane.b32.xlu0 %v2296_v50, %s1851_s23 }
 0x289   : > { %579 = vrot.lane.b32.xlu1 %v2308_v60, %s1851_s23 }
 0x291   : > { %573 = vrot.lane.b32.xlu1 %v2312_v61, %s1851_s23  ;;  %810 = vmax.index.xlane.f32.xlu2 %v809_v43 }
 0x298   : > { %v2361_v26 = vpop.xlane.xlu1 %807 }
 0x29b   : > { %v482_v32 = vpop.xlane.xlu2 %481 }
 0x29c   : > { %v2324_v4 = vsub.f32 %v2136_v56, %v482_v32  ;;  %v523_v56 = vmul.f32 1.442695, %v2332_v15 }
 0x29e   : > { %v533_v12 = vmul.f32 1.442695, %v2324_v4 }
 0x2a0   : > { %1609 = vpow2.f32 %v533_v12  ;;  %v2364_v43 = vpop.xlane.xlu1 %843  ;;  %v845_v12 = vsel %vm607_vm1, %v783_v0, -inf }
 0x2a1   : > { %1611 = vpow2.f32 %v529_v9  ;;  %2866 = vst [vmem:[#allocation22_spill] sm:$0xff] %v2364_v43 }
 0x2a2   : > { %1613 = vpow2.f32 %v523_v56 }
 0x2a3   : > { %v2334_v18 = vpop.xlane.xlu2 %801 }
 0x2a6   : > { %v2338_v40 = vpop.eup %1609 }
 0x2a7   : > { %581 = vrot.lane.b32.xlu0 %v2338_v40, %s1851_s23  ;;  %v2343_v19 = vpop.eup %1611 }
 0x2a8   : > { %v2351_v48 = vpop.eup %1613 }
 0x2a9   : > { %577 = vrot.lane.b32.xlu2 %v2343_v19, %s1851_s23 }
 0x2ab   : > { %v2347_v21 = vpop.xlane.xlu2 %837 }
 0x2b1   : > { %571 = vrot.lane.b32.xlu2 %v2351_v48, %s1851_s23 }
 0x2b3   : > { %v2355_v3 = vpop.xlane.xlu2 %828 }
 0x2b8   : > { %v586_v56 = vpop.permute.xlu1 %585 }
 0x2bb   : > { %609 = vadd.xlane.f32.xlu1 %v608_v35  ;;  %v2358_v37 = vpop.xlane.xlu2 %819  ;;  %v647_v35 = vsel %vm607_vm1, %v586_v56, 0.0 }
 0x2bc   : > { %2865 = vst [vmem:[#allocation21_spill] sm:$0xff] %v2358_v37 }
 0x2c3   : > { %v584_v36 = vpop.permute.xlu2 %583 }
 0x2c4   : > { %v644_v52 = vsel %vm607_vm1, %v584_v36, 0.0  ;;  %v2370_v36 = vsub.f32 %v2106_v45, %v458_v46 }
 0x2c5   : > { %645 = vadd.xlane.f32.xlu1 %v644_v52  ;;  %v2373_v52 = vpop.xlane.xlu0 %813 }
 0x2c6   : > { %v517_v41 = vmul.f32 1.442695, %v2370_v36 }
 0x2c8   : > { %1615 = vpow2.f32 %v517_v41 }
 0x2cb   : > { %v562_v32 = vpop.permute.xlu2 %561 }
 0x2cc   : > { %v611_v9 = vsel %vm607_vm1, %v562_v32, 0.0 }
 0x2cd   : > { %v2385_v45 = vpop.xlane.xlu0 %804 }
 0x2ce   : > { %v2379_v0 = vpop.eup %1615 }
 0x2d1   : > { %621 = vadd.xlane.f32.xlu0 %v620_v57  ;;  %v2376_v57 = vsub.f32 %v2131_v54, %v494_v25 }
 0x2d3   : > { %v541_v32 = vmul.f32 1.442695, %v2376_v57 }
 0x2d5   : > { %1617 = vpow2.f32 %v541_v32  ;;  %v2392_v25 = vpop.xlane.xlu0 %840 }
 0x2d6   : > { %2868 = vst [vmem:[#allocation24_spill] sm:$0xff] %v2392_v25 }
 0x2d9   : > { %612 = vadd.xlane.f32.xlu0 %v611_v9 }
 0x2da   : > { %846 = vmax.index.xlane.f32.xlu2 %v845_v12 }
 0x2db   : > { %v2387_v46 = vpop.eup %1617 }
 0x2dd   : > { %v576_v43 = vpop.permute.xlu0 %575 }
 0x2de   : > { %v632_v25 = vsel %vm607_vm1, %v576_v43, 0.0 }
 0x2e1   : > { %648 = vadd.xlane.f32.xlu0 %v647_v35 }
 0x2e3   : > { %v2383_v9 = vpop.xlane.xlu1 %834 }
 0x2e4   : > { %2867 = vst [vmem:[#allocation23_spill] sm:$0xff] %v2383_v9 }
 0x2e5   : > { %v570_v8 = vpop.permute.xlu0 %569 }
 0x2f2   : > { %565 = vrot.lane.b32.xlu2 %v2379_v0, %s1851_s23 }
 0x2fa   : > { %589 = vrot.lane.b32.xlu2 %v2387_v46, %s1851_s23 }
 0x2fb   : > { %v580_v12 = vpop.permute.xlu1 %579 }
 0x2fc   : > { %v638_v56 = vsel %vm607_vm1, %v580_v12, 0.0  ;;  %v2399_v12 = vpop.xlane.xlu0 %831 }
 0x2fd   : > { %639 = vadd.xlane.f32.xlu0 %v638_v56 }
 0x303   : > { %v574_v35 = vpop.permute.xlu1 %573 }
 0x304   : > { %v2394_v41 = vpop.xlane.xlu2 %810  ;;  %v629_v32 = vsel %vm607_vm1, %v574_v35, 0.0  ;;  %v2401_v56 = vpop.xlane.xlu0 %822  ;;  %v623_v35 = vsel %vm607_vm1, %v570_v8, 0.0 }
 0x305   : > { %2869 = vst [vmem:[#allocation25_spill] sm:$0xff] %v2394_v41  ;;  %630 = vadd.xlane.f32.xlu0 %v629_v32 }
 0x306   : > { %2870 = vst [vmem:[#allocation26_spill] sm:$0xff] %v2401_v56 }
 0x30c   : > { %v578_v54 = vpop.permute.xlu2 %577  ;;  %v564_v41 = vpop.permute.xlu0 %563 }
 0x30d   : > { %v635_v51 = vsel %vm607_vm1, %v578_v54, 0.0 }
 0x30e   : > { %636 = vadd.xlane.f32.xlu1 %v635_v51  ;;  %v614_v51 = vsel %vm607_vm1, %v564_v41, 0.0 }
 0x314   : > { %v572_v9 = vpop.permute.xlu2 %571  ;;  %v588_v54 = vpop.permute.xlu0 %587 }
 0x315   : > { %v626_v62 = vsel %vm607_vm1, %v572_v9, 0.0  ;;  %v650_v8 = vsel %vm607_vm1, %v588_v54, 0.0 }
 0x316   : > { %627 = vadd.xlane.f32.xlu1 %v626_v62 }
 0x323   : > { %633 = vadd.xlane.f32.xlu2 %v632_v25  ;;  %v582_v25 = vpop.permute.xlu0 %581 }
 0x324   : > { %v641_v41 = vsel %vm607_vm1, %v582_v25, 0.0 }
 0x32b   : > { %624 = vadd.xlane.f32.xlu2 %v623_v35 }
 0x32e   : > { %v610_v32 = vpop.xlane.xlu1 %609 }
 0x32f   : > { %1619 = vrcp.f32 %v610_v32 }
 0x330   : > { %1621 = vlog2.f32 %v610_v32 }
 0x333   : > { %615 = vadd.xlane.f32.xlu2 %v614_v51 }
 0x335   : > { %v1620_v9 = vpop.eup %1619 }
 0x336   : > { %v1622_v62 = vpop.eup %1621  ;;  %v672_v1 = vmul.f32 %v1620_v9, %v2194_v16 }
 0x337   : > { %v2407_v37 = vmul.f32 0.6931472, %v1622_v62 }
 0x338   : > { %1056 = vrot.lane.b32.xlu0 %v672_v1, %s1851_s23  ;;  %v646_v9 = vpop.xlane.xlu1 %645 }
 0x339   : > { %v720_v43 = vsub.f32 %v2185_v10, %v2407_v37 }
 0x33b   : > { %651 = vadd.xlane.f32.xlu2 %v650_v8  ;;  %v880_v35 = vmul.f32 %v720_v43, %v672_v1 }
 0x340   : > { %912 = vrot.lane.b32.xlu0 %v880_v35, %s1851_s23 }
 0x343   : > { %642 = vadd.xlane.f32.xlu2 %v641_v41 }
 0x344   : > { %v622_v32 = vpop.xlane.xlu0 %621 }
 0x345   : > { %1623 = vrcp.f32 %v622_v32 }
 0x34b   : > { %v1624_v10 = vpop.eup %1623 }
 0x34c   : > { %v613_v51 = vpop.xlane.xlu0 %612  ;;  %v676_v1 = vmul.f32 %v1624_v10, %v2202_v20 }
 0x34d   : > { %v2415_v16 = vpop.xlane.xlu2 %846 }
 0x34e   : > { %2871 = vst [vmem:[#allocation27_spill] sm:$0xff] %v2415_v16 }
 0x354   : > { %v649_v62 = vpop.xlane.xlu0 %648 }
 0x355   : > { %1625 = vrcp.f32 %v649_v62  ;;  %v566_v56 = vpop.permute.xlu2 %565 }
 0x356   : > { %1627 = vlog2.f32 %v649_v62  ;;  %v617_v54 = vsel %vm607_vm1, %v566_v56, 0.0 }
 0x357   : > { %1629 = vlog2.f32 %v646_v9  ;;  %618 = vadd.xlane.f32.xlu1 %v617_v54 }
 0x358   : > { %1631 = vrcp.f32 %v613_v51 }
 0x359   : > { %1633 = vrcp.f32 %v646_v9 }
 0x35a   : > { %1635 = vlog2.f32 %v622_v32 }
 0x35b   : > { %v1626_v43 = vpop.eup %1625  ;;  %1064 = vrot.lane.b32.xlu2 %v676_v1, %s1851_s23  ;;  %1637 = vlog2.f32 %v613_v51 }
 0x35c   : > { %v1628_v8 = vpop.eup %1627  ;;  %v685_v62 = vmul.f32 %v1626_v43, %v2253_v2 }
 0x35d   : > { %v1630_v25 = vpop.eup %1629  ;;  %v2420_v35 = vmul.f32 0.6931472, %v1628_v8  ;;  %v590_v41 = vpop.permute.xlu2 %589 }
 0x35e   : > { %v1632_v16 = vpop.eup %1631  ;;  %v653_v30 = vsel %vm607_vm1, %v590_v41, 0.0  ;;  %v2426_v54 = vmul.f32 0.6931472, %v1630_v25 }
 0x35f   : > { %v733_v56 = vsub.f32 %v2246_v59, %v2420_v35  ;;  %654 = vadd.xlane.f32.xlu1 %v653_v30  ;;  %v673_v20 = vmul.f32 %v1632_v16, %v2283_v33  ;;  %v1634_v8 = vpop.eup %1633 }
 0x360   : > { %v732_v9 = vsub.f32 %v2262_v7, %v2426_v54  ;;  %v684_v41 = vmul.f32 %v1634_v8, %v2273_v22  ;;  %v1636_v59 = vpop.eup %1635 }
 0x361   : > { %v2429_v10 = vmul.f32 %v733_v56, %v685_v62  ;;  %v2436_v2 = vmul.f32 0.6931472, %v1636_v59  ;;  %v1638_v7 = vpop.eup %1637 }
 0x362   : > { %v892_v14 = vmul.f32 %v732_v9, %v684_v41  ;;  %v2442_v32 = vmul.f32 0.6931472, %v1638_v7 }
 0x363   : > { %1058 = vrot.lane.b32.xlu2 %v673_v20, %s1851_s23  ;;  %v724_v30 = vsub.f32 %v2191_v13, %v2436_v2 }
 0x365   : > { %v884_v33 = vmul.f32 %v724_v30, %v676_v1 }
 0x36b   : > { %936 = vrot.lane.b32.xlu2 %v892_v14, %s1851_s23  ;;  %v721_v14 = vsub.f32 %v2269_v17, %v2442_v32  ;;  %v1853_v17 = vmov 0.0  }
 0x36c   : > { %1024 = vst [vmem:[%s2452_s27] sm:$0xff] %v1853_v17 }
 0x36d   : > { %v881_v16 = vmul.f32 %v721_v14, %v673_v20  ;;  %1025 = vst [vmem:[%s2452_s27 + $0x8] sm:$0xff] %v1853_v17 }
 0x36e   : > { %1026 = vst [vmem:[%s2452_s27 + $0x10] sm:$0xff] %v1853_v17 }
 0x36f   : > { %1027 = vst [vmem:[%s2452_s27 + $0x18] sm:$0xff] %v1853_v17 }
 0x370   : > { %1028 = vst [vmem:[%s2452_s27 + $0x20] sm:$0xff] %v1853_v17 }
 0x371   : > { %1029 = vst [vmem:[%s2452_s27 + $0x28] sm:$0xff] %v1853_v17 }
 0x372   : > { %1030 = vst [vmem:[%s2452_s27 + $0x30] sm:$0xff] %v1853_v17 }
 0x373   : > { %1082 = vrot.lane.b32.xlu2 %v685_v62, %s1851_s23  ;;  %1031 = vst [vmem:[%s2452_s27 + $0x38] sm:$0xff] %v1853_v17 }
 0x374   : > { %1032 = vst [vmem:[%s2452_s27 + $0x40] sm:$0xff] %v1853_v17 }
 0x375   : > { %1033 = vst [vmem:[%s2452_s27 + $0x48] sm:$0xff] %v1853_v17 }
 0x376   : > { %1034 = vst [vmem:[%s2452_s27 + $0x50] sm:$0xff] %v1853_v17 }
 0x377   : > { %1035 = vst [vmem:[%s2452_s27 + $0x58] sm:$0xff] %v1853_v17 }
 0x378   : > { %920 = vrot.lane.b32.xlu1 %v884_v33, %s1851_s23  ;;  %1036 = vst [vmem:[%s2452_s27 + $0x60] sm:$0xff] %v1853_v17 }
 0x379   : > { %1037 = vst [vmem:[%s2452_s27 + $0x68] sm:$0xff] %v1853_v17 }
 0x37a   : > { %1038 = vst [vmem:[%s2452_s27 + $0x70] sm:$0xff] %v1853_v17 }
 0x37b   : > { %1039 = vst [vmem:[%s2452_s27 + $0x78] sm:$0xff] %v1853_v17 }
 0x380   : > { %1080 = vrot.lane.b32.xlu1 %v684_v41, %s1851_s23 }
 0x381   : > { %v637_v22 = vpop.xlane.xlu1 %636 }
 0x382   : > { %1639 = vrcp.f32 %v637_v22 }
 0x383   : > { %1641 = vlog2.f32 %v637_v22 }
 0x388   : > { %v1640_v13 = vpop.eup %1639  ;;  %914 = vrot.lane.b32.xlu1 %v881_v16, %s1851_s23 }
 0x389   : > { %v1642_v43 = vpop.eup %1641  ;;  %v681_v25 = vmul.f32 %v1640_v13, %v2343_v19  ;;  %v640_v19 = vpop.xlane.xlu0 %639 }
 0x38a   : > { %v2448_v51 = vmul.f32 0.6931472, %v1642_v43  ;;  %v628_v22 = vpop.xlane.xlu1 %627 }
 0x38c   : > { %v729_v1 = vsub.f32 %v2321_v47, %v2448_v51 }
 0x38e   : > { %v889_v56 = vmul.f32 %v729_v1, %v681_v25 }
 0x390   : > { %930 = vrot.lane.b32.xlu2 %v889_v56, %s1851_s23  ;;  %1074 = vrot.lane.b32.xlu1 %v681_v25, %s1851_s23 }
 0x391   : > { %v2477_v9 = vpop.xlane.xlu0 %630 }
 0x396   : > { %v634_v47 = vpop.xlane.xlu2 %633 }
 0x397   : > { %1643 = vrcp.f32 %v634_v47 }
 0x398   : > { %1645 = vlog2.f32 %v634_v47 }
 0x39d   : > { %v1644_v62 = vpop.eup %1643 }
 0x39e   : > { %v625_v20 = vpop.xlane.xlu2 %624  ;;  %v680_v8 = vmul.f32 %v1644_v62, %v2229_v49  ;;  %v1646_v41 = vpop.eup %1645  ;;  %v864_v49 = vsub.f32 0.0, %v2407_v37 }
 0x39f   : > { %1647 = vrcp.f32 %v625_v20  ;;  %v2479_v30 = vmul.f32 0.6931472, %v1646_v41 }
 0x3a0   : > { %1072 = vrot.lane.b32.xlu0 %v680_v8, %s1851_s23  ;;  %1649 = vlog2.f32 %v625_v20 }
 0x3a1   : > { %v728_v14 = vsub.f32 %v2218_v39, %v2479_v30 }
 0x3a3   : > { %v888_v1 = vmul.f32 %v728_v14, %v680_v8 }
 0x3a5   : > { %v1648_v59 = vpop.eup %1647 }
 0x3a6   : > { %v616_v33 = vpop.xlane.xlu2 %615  ;;  %v677_v7 = vmul.f32 %v1648_v59, %v2236_v53  ;;  %v1650_v13 = vpop.eup %1649  ;;  %v848_v53 = vcvt.s32.f32 %v2334_v18 }
 0x3a7   : > { %1651 = vrcp.f32 %v616_v33  ;;  %v2494_v17 = vmul.f32 0.6931472, %v1650_v13 }
 0x3a8   : > { %1653 = vlog2.f32 %v616_v33  ;;  %1066 = vrot.lane.b32.xlu0 %v677_v7, %s1851_s23 }
 0x3a9   : > { %1655 = vlog2.f32 %v628_v22 }
 0x3aa   : > { %v1057_v16 = vpop.permute.xlu0 %1056  ;;  %1657 = vrcp.f32 %v628_v22 }
 0x3ab   : > { %1104 = vst.msk [vmem:[%s2452_s27] sm:$0xff] %vm607_vm1, %v1057_v16  ;;  %1659 = vlog2.f32 %v640_v19  ;;  %v865_v16 = vsub.f32 0.0, %v2442_v32 }
 0x3ac   : > { %1121 = vst.msk [vmem:[%s2452_s27] sm:$0xff] %vm1120_vm2, %v864_v49 }
 0x3ad   : > { %v1652_v43 = vpop.eup %1651  ;;  %1186 = vst.msk [vmem:[%s2452_s27] sm:$0xff] %vm1185_vm3, %v2179_v5  ;;  %v725_v5 = vsub.f32 %v2224_v44, %v2494_v17 }
 0x3ae   : > { %v1654_v37 = vpop.eup %1653  ;;  %v652_v39 = vpop.xlane.xlu2 %651  ;;  %v674_v25 = vmul.f32 %v1652_v43, %v2292_v42  ;;  %1203 = vst.msk [vmem:[%s2452_s27] sm:$0xff] %vm1202_vm4, %v848_v53  ;;  %v849_v53 = vcvt.s32.f32 %v2385_v45 }
 0x3af   : > { %v2499_v56 = vmul.f32 0.6931472, %v1654_v37  ;;  %v1656_v47 = vpop.eup %1655  ;;  %1661 = vrcp.f32 %v652_v39  ;;  %v885_v41 = vmul.f32 %v725_v5, %v677_v7 }
 0x3b0   : > { %928 = vrot.lane.b32.xlu0 %v888_v1, %s1851_s23  ;;  %1060 = vrot.lane.b32.xlu1 %v674_v25, %s1851_s23  ;;  %v1658_v62 = vpop.eup %1657  ;;  %v2507_v20 = vmul.f32 0.6931472, %v1656_v47  ;;  %1663 = vrcp.f32 %v640_v19  ;;  %v852_v19 = vcvt.s32.f32 %v2373_v52 }
 0x3b1   : > { %v722_v18 = vsub.f32 %v2278_v24, %v2499_v56  ;;  %v678_v59 = vmul.f32 %v1658_v62, %v2351_v48  ;;  %v1660_v44 = vpop.eup %1659  ;;  %1665 = vlog2.f32 %v2477_v9  ;;  %v868_v48 = vsub.f32 0.0, %v2436_v2 }
 0x3b2   : > { %v726_v24 = vsub.f32 %v2332_v15, %v2507_v20  ;;  %v2520_v7 = vmul.f32 0.6931472, %v1660_v44  ;;  %1667 = vrcp.f32 %v2477_v9 }
 0x3b3   : > { %v882_v8 = vmul.f32 %v722_v18, %v674_v25  ;;  %1669 = vlog2.f32 %v652_v39 }
 0x3b4   : > { %v886_v22 = vmul.f32 %v726_v24, %v678_v59 }
 0x3b5   : > { %916 = vrot.lane.b32.xlu2 %v882_v8, %s1851_s23  ;;  %v1662_v33 = vpop.eup %1661 }
 0x3b6   : > { %v2510_v42 = vpop.xlane.xlu2 %642  ;;  %v686_v49 = vmul.f32 %v1662_v33, %v2296_v50  ;;  %v1664_v14 = vpop.eup %1663  ;;  %v730_v50 = vsub.f32 %v2301_v27, %v2520_v7 }
 0x3b7   : > { %v1666_v52 = vpop.eup %1665  ;;  %v682_v2 = vmul.f32 %v1664_v14, %v2308_v60  ;;  %v860_v14 = vcvt.s32.f32 %v2347_v21  ;;  %v857_v21 = vcvt.s32.f32 %v2355_v3  ;;  %v872_v3 = vsub.f32 0.0, %v2479_v30 }
 0x3b8   : > { %922 = vrot.lane.b32.xlu0 %v885_v41, %s1851_s23  ;;  %1068 = vrot.lane.b32.xlu1 %v678_v59, %s1851_s23  ;;  %v1668_v27 = vpop.eup %1667  ;;  %v869_v30 = vsub.f32 0.0, %v2494_v17  ;;  %v874_v17 = vsub.f32 0.0, %v2520_v7 }
 0x3b9   : > { %v679_v9 = vmul.f32 %v1668_v27, %v2312_v61  ;;  %v1670_v37 = vpop.eup %1669  ;;  %v877_v61 = vsub.f32 0.0, %v2420_v35 }
 0x3bd   : > { %924 = vrot.lane.b32.xlu2 %v886_v22, %s1851_s23 }
 0x3be   : > { %v1065_v15 = vpop.permute.xlu2 %1064 }
 0x3bf   : > { %1108 = vst.msk [vmem:[%s2452_s27 + $0x20] sm:$0xff] %vm607_vm1, %v1065_v15 }
 0x3c0   : > { %1125 = vst.msk [vmem:[%s2452_s27 + $0x20] sm:$0xff] %vm1120_vm2, %v868_v48  ;;  %1084 = vrot.lane.b32.xlu0 %v686_v49, %s1851_s23  ;;  %938 = vrot.lane.b32.xlu1 %v2429_v10, %s1851_s23  ;;  %v2542_v10 = vmul.f32 0.6931472, %v1666_v52  ;;  %v876_v48 = vsub.f32 0.0, %v2426_v54  ;;  %v913_v54 = vpop.permute.xlu0 %912 }
 0x3c1   : > { %1190 = vst.msk [vmem:[%s2452_s27 + $0x20] sm:$0xff] %vm1185_vm3, %v2164_v63  ;;  %v890_v63 = vmul.f32 %v730_v50, %v682_v2 }
 0x3c2   : > { %1207 = vst.msk [vmem:[%s2452_s27 + $0x20] sm:$0xff] %vm1202_vm4, %v852_v19  ;;  %v727_v60 = vsub.f32 %v2305_v55, %v2542_v10 }
 0x3c4   : > { %v887_v43 = vmul.f32 %v727_v60, %v679_v9 }
 0x3c5   : > { %1076 = vrot.lane.b32.xlu2 %v682_v2, %s1851_s23 }
 0x3c6   : > { %v1059_v13 = vpop.permute.xlu2 %1058 }
 0x3c7   : > { %1105 = vst.msk [vmem:[%s2452_s27 + $0x8] sm:$0xff] %vm607_vm1, %v1059_v13 }
 0x3c8   : > { %1122 = vst.msk [vmem:[%s2452_s27 + $0x8] sm:$0xff] %vm1120_vm2, %v865_v16  ;;  %932 = vrot.lane.b32.xlu1 %v890_v63, %s1851_s23 }
 0x3c9   : > { %1187 = vst.msk [vmem:[%s2452_s27 + $0x8] sm:$0xff] %vm1185_vm3, %v2211_v28  ;;  %v2560_v28 = vmul.f32 0.6931472, %v1670_v37 }
 0x3ca   : > { %v619_v32 = vpop.xlane.xlu1 %618  ;;  %1204 = vst.msk [vmem:[%s2452_s27 + $0x8] sm:$0xff] %vm1202_vm4, %v849_v53 }
 0x3cb   : > { %1671 = vrcp.f32 %v619_v32  ;;  %v734_v25 = vsub.f32 %v2288_v34, %v2560_v28 }
 0x3cc   : > { %1673 = vlog2.f32 %v619_v32  ;;  %v850_v32 = vcvt.s32.f32 %v2361_v26 }
 0x3cd   : > { %1070 = vrot.lane.b32.xlu2 %v679_v9, %s1851_s23  ;;  %v2872_v9 = vld [vmem:[#allocation17_spill] sm:$0xff] }
 0x3ce   : > { %v937_v45 = vpop.permute.xlu2 %936 }
 0x3cf   : > { %v996_v50 = vsel %vm607_vm1, %v937_v45, 0.0  ;;  %v871_v45 = vsub.f32 0.0, %v2542_v10 }
 0x3d0   : > { %926 = vrot.lane.b32.xlu1 %v887_v43, %s1851_s23  ;;  %v2873_v43 = vld [vmem:[#allocation18_spill] sm:$0xff] }
 0x3d1   : > { %v1672_v39 = vpop.eup %1671 }
 0x3d2   : > { %v655_v55 = vpop.xlane.xlu1 %654  ;;  %v675_v1 = vmul.f32 %v1672_v39, %v2379_v0  ;;  %v1674_v18 = vpop.eup %1673  ;;  %v894_v0 = vmul.f32 %v734_v25, %v686_v49 }
 0x3d3   : > { %1675 = vrcp.f32 %v655_v55  ;;  %v2571_v8 = vmul.f32 0.6931472, %v1674_v18 }
 0x3d4   : > { %1677 = vlog2.f32 %v655_v55  ;;  %1062 = vrot.lane.b32.xlu0 %v675_v1, %s1851_s23  ;;  %v2874_v55 = vld [vmem:[#allocation21_spill] sm:$0xff] }
 0x3d5   : > { %v723_v35 = vsub.f32 %v2370_v36, %v2571_v8  ;;  %1679 = vrcp.f32 %v2510_v42 }
 0x3d6   : > { %v1083_v47 = vpop.permute.xlu2 %1082  ;;  %1681 = vlog2.f32 %v2510_v42 }
 0x3d7   : > { %1117 = vst.msk [vmem:[%s2452_s27 + $0x68] sm:$0xff] %vm607_vm1, %v1083_v47  ;;  %v2876_v47 = vld [vmem:[#allocation16_spill] sm:$0xff] }
 0x3d8   : > { %1134 = vst.msk [vmem:[%s2452_s27 + $0x68] sm:$0xff] %vm1120_vm2, %v877_v61  ;;  %v2875_v61 = vld [vmem:[#allocation26_spill] sm:$0xff] }
 0x3d9   : > { %v1676_v5 = vpop.eup %1675  ;;  %v855_v25 = vcvt.s32.f32 %v2875_v61 }
 0x3da   : > { %v1678_v62 = vpop.eup %1677  ;;  %v687_v41 = vmul.f32 %v1676_v5, %v2387_v46  ;;  %v883_v46 = vmul.f32 %v723_v35, %v675_v1  ;;  %v854_v1 = vcvt.s32.f32 %v2874_v55 }
 0x3db   : > { %v2574_v59 = vmul.f32 0.6931472, %v1678_v62  ;;  %v1680_v44 = vpop.eup %1679 }
 0x3dc   : > { %940 = vrot.lane.b32.xlu0 %v894_v0, %s1851_s23  ;;  %1086 = vrot.lane.b32.xlu1 %v687_v41, %s1851_s23  ;;  %v1682_v33 = vpop.eup %1681  ;;  %v683_v36 = vmul.f32 %v1680_v44, %v2338_v40  ;;  %v873_v40 = vsub.f32 0.0, %v2448_v51  ;;  %v2877_v44 = vld [vmem:[#allocation25_spill] sm:$0xff] }
 0x3dd   : > { %v735_v34 = vsub.f32 %v2376_v57, %v2574_v59  ;;  %v2586_v57 = vmul.f32 0.6931472, %v1682_v33  ;;  %v851_v33 = vcvt.s32.f32 %v2877_v44 }
 0x3df   : > { %v895_v24 = vmul.f32 %v735_v34, %v687_v41  ;;  %v731_v42 = vsub.f32 %v2324_v4, %v2586_v57 }
 0x3e1   : > { %942 = vrot.lane.b32.xlu2 %v895_v24, %s1851_s23  ;;  %v891_v49 = vmul.f32 %v731_v42, %v683_v36  ;;  %v867_v24 = vsub.f32 0.0, %v2571_v8 }
 0x3e4   : > { %918 = vrot.lane.b32.xlu0 %v883_v46, %s1851_s23 }
 0x3ea   : > { %v921_v22 = vpop.permute.xlu1 %920  ;;  %v931_v51 = vpop.permute.xlu2 %930 }
 0x3eb   : > { %v987_v16 = vsel %vm607_vm1, %v931_v51, 0.0 }
 0x3ec   : > { %1078 = vrot.lane.b32.xlu0 %v683_v36, %s1851_s23  ;;  %v879_v36 = vsub.f32 0.0, %v2574_v59 }
 0x3f2   : > { %v1081_v15 = vpop.permute.xlu1 %1080 }
 0x3f3   : > { %1116 = vst.msk [vmem:[%s2452_s27 + $0x60] sm:$0xff] %vm607_vm1, %v1081_v15 }
 0x3f4   : > { %1133 = vst.msk [vmem:[%s2452_s27 + $0x60] sm:$0xff] %vm1120_vm2, %v876_v48  ;;  %934 = vrot.lane.b32.xlu0 %v891_v49, %s1851_s23 }
 0x3f5   : > { %1198 = vst.msk [vmem:[%s2452_s27 + $0x60] sm:$0xff] %vm1185_vm3, %v2187_v11  ;;  %v960_v11 = vsel %vm607_vm1, %v913_v54, 0.0 }
 0x3f6   : > { %1215 = vst.msk [vmem:[%s2452_s27 + $0x60] sm:$0xff] %vm1202_vm4, %v860_v14  ;;  %v1683_v14 = vld [vmem:[%s2015_s5 + $0x68] sm:$0xff] }
 0x3fa   : > { %v915_v4 = vpop.permute.xlu1 %914 }
 0x402   : > { %v1075_v19 = vpop.permute.xlu1 %1074 }
 0x403   : > { %1113 = vst.msk [vmem:[%s2452_s27 + $0x48] sm:$0xff] %vm607_vm1, %v1075_v19  ;;  %v2879_v19 = vld [vmem:[#allocation23_spill] sm:$0xff] }
 0x404   : > { %1130 = vst.msk [vmem:[%s2452_s27 + $0x48] sm:$0xff] %vm1120_vm2, %v873_v40 }
 0x405   : > { %1195 = vst.msk [vmem:[%s2452_s27 + $0x48] sm:$0xff] %vm1185_vm3, %v2243_v58  ;;  %v856_v58 = vcvt.s32.f32 %v2336_v29  ;;  %v853_v29 = vcvt.s32.f32 %v2349_v38 }
 0x406   : > { %961 = vadd.xlane.f32.xlu1 %v960_v11  ;;  %1212 = vst.msk [vmem:[%s2452_s27 + $0x48] sm:$0xff] %vm1202_vm4, %v857_v21  ;;  %v859_v21 = vcvt.s32.f32 %v2879_v19  ;;  %v2880_v11 = vld [vmem:[#allocation20_spill] sm:$0xff] }
 0x40e   : > { %997 = vadd.xlane.f32.xlu1 %v996_v50 }
 0x40f   : > { %v2617_v52 = vpop.permute.xlu2 %916 }
 0x410   : > { %v966_v0 = vsel %vm607_vm1, %v2617_v52, 0.0 }
 0x412   : > { %v1073_v2 = vpop.permute.xlu0 %1072 }
 0x413   : > { %1112 = vst.msk [vmem:[%s2452_s27 + $0x40] sm:$0xff] %vm607_vm1, %v1073_v2 }
 0x414   : > { %1129 = vst.msk [vmem:[%s2452_s27 + $0x40] sm:$0xff] %vm1120_vm2, %v872_v3 }
 0x415   : > { %1194 = vst.msk [vmem:[%s2452_s27 + $0x40] sm:$0xff] %vm1185_vm3, %v2207_v23  ;;  %v972_v23 = vsel %vm607_vm1, %v921_v22, 0.0  ;;  %v2878_v22 = vld [vmem:[#allocation19_spill] sm:$0xff] }
 0x416   : > { %988 = vadd.xlane.f32.xlu1 %v987_v16  ;;  %1211 = vst.msk [vmem:[%s2452_s27 + $0x40] sm:$0xff] %vm1202_vm4, %v856_v58 }
 0x417   : > { %v925_v13 = vpop.permute.xlu2 %924 }
 0x418   : > { %v978_v27 = vsel %vm607_vm1, %v925_v13, 0.0 }
 0x41a   : > { %v1067_v63 = vpop.permute.xlu0 %1066 }
 0x41b   : > { %1109 = vst.msk [vmem:[%s2452_s27 + $0x28] sm:$0xff] %vm607_vm1, %v1067_v63 }
 0x41c   : > { %1126 = vst.msk [vmem:[%s2452_s27 + $0x28] sm:$0xff] %vm1120_vm2, %v869_v30 }
 0x41d   : > { %1191 = vst.msk [vmem:[%s2452_s27 + $0x28] sm:$0xff] %vm1185_vm3, %v2214_v31  ;;  %v866_v31 = vsub.f32 0.0, %v2499_v56  ;;  %v858_v56 = vcvt.s32.f32 %v2399_v12  ;;  %v870_v12 = vsub.f32 0.0, %v2507_v20  ;;  %v878_v20 = vsub.f32 0.0, %v2560_v28 }
 0x41e   : > { %973 = vadd.xlane.f32.xlu0 %v972_v23  ;;  %979 = vadd.xlane.f32.xlu1 %v978_v27  ;;  %1208 = vst.msk [vmem:[%s2452_s27 + $0x28] sm:$0xff] %vm1202_vm4, %v853_v29 }
 0x41f   : > { %v1077_v53 = vpop.permute.xlu2 %1076 }
 0x420   : > { %1114 = vst.msk [vmem:[%s2452_s27 + $0x50] sm:$0xff] %vm607_vm1, %v1077_v53 }
 0x421   : > { %1131 = vst.msk [vmem:[%s2452_s27 + $0x50] sm:$0xff] %vm1120_vm2, %v874_v17 }
 0x422   : > { %1196 = vst.msk [vmem:[%s2452_s27 + $0x50] sm:$0xff] %vm1185_vm3, %v2258_v6  ;;  %v1061_v38 = vpop.permute.xlu1 %1060  ;;  %v929_v60 = vpop.permute.xlu0 %928  ;;  %v963_v6 = vsel %vm607_vm1, %v915_v4, 0.0  ;;  %v875_v4 = vsub.f32 0.0, %v2586_v57 }
 0x423   : > { %1106 = vst.msk [vmem:[%s2452_s27 + $0x10] sm:$0xff] %vm607_vm1, %v1061_v38  ;;  %v984_v7 = vsel %vm607_vm1, %v929_v60, 0.0 }
 0x424   : > { %1123 = vst.msk [vmem:[%s2452_s27 + $0x10] sm:$0xff] %vm1120_vm2, %v866_v31  ;;  %985 = vadd.xlane.f32.xlu2 %v984_v7 }
 0x425   : > { %1188 = vst.msk [vmem:[%s2452_s27 + $0x10] sm:$0xff] %vm1185_vm3, %v2872_v9 }
 0x426   : > { %964 = vadd.xlane.f32.xlu0 %v963_v6  ;;  %1205 = vst.msk [vmem:[%s2452_s27 + $0x10] sm:$0xff] %vm1202_vm4, %v850_v32 }
 0x427   : > { %v1071_v26 = vpop.permute.xlu2 %1070  ;;  %1213 = vst.msk [vmem:[%s2452_s27 + $0x50] sm:$0xff] %vm1202_vm4, %v858_v56 }
 0x428   : > { %1111 = vst.msk [vmem:[%s2452_s27 + $0x38] sm:$0xff] %vm607_vm1, %v1071_v26 }
 0x429   : > { %1128 = vst.msk [vmem:[%s2452_s27 + $0x38] sm:$0xff] %vm1120_vm2, %v871_v45 }
 0x42a   : > { %1193 = vst.msk [vmem:[%s2452_s27 + $0x38] sm:$0xff] %vm1185_vm3, %v2873_v43  ;;  %v1069_v37 = vpop.permute.xlu1 %1068  ;;  %v923_v39 = vpop.permute.xlu0 %922 }
 0x42b   : > { %1110 = vst.msk [vmem:[%s2452_s27 + $0x30] sm:$0xff] %vm607_vm1, %v1069_v37  ;;  %v975_v10 = vsel %vm607_vm1, %v923_v39, 0.0 }
 0x42c   : > { %1127 = vst.msk [vmem:[%s2452_s27 + $0x30] sm:$0xff] %vm1120_vm2, %v870_v12  ;;  %976 = vadd.xlane.f32.xlu2 %v975_v10 }
 0x42d   : > { %1192 = vst.msk [vmem:[%s2452_s27 + $0x30] sm:$0xff] %vm1185_vm3, %v2876_v47 }
 0x42e   : > { %1209 = vst.msk [vmem:[%s2452_s27 + $0x30] sm:$0xff] %vm1202_vm4, %v854_v1 }
 0x42f   : > { %1210 = vst.msk [vmem:[%s2452_s27 + $0x38] sm:$0xff] %vm1202_vm4, %v855_v25 }
 0x432   : > { %v939_v18 = vpop.permute.xlu1 %938  ;;  %v1085_v5 = vpop.permute.xlu0 %1084 }
 0x433   : > { %1118 = vst.msk [vmem:[%s2452_s27 + $0x70] sm:$0xff] %vm607_vm1, %v1085_v5  ;;  %v999_v62 = vsel %vm607_vm1, %v939_v18, 0.0 }
 0x434   : > { %1135 = vst.msk [vmem:[%s2452_s27 + $0x70] sm:$0xff] %vm1120_vm2, %v878_v20  ;;  %1000 = vadd.xlane.f32.xlu0 %v999_v62  ;;  %967 = vadd.xlane.f32.xlu2 %v966_v0 }
 0x43a   : > { %v933_v41 = vpop.permute.xlu1 %932 }
 0x43b   : > { %v990_v28 = vsel %vm607_vm1, %v933_v41, 0.0  ;;  %v943_v59 = vpop.permute.xlu2 %942 }
 0x43c   : > { %991 = vadd.xlane.f32.xlu0 %v990_v28  ;;  %v1005_v54 = vsel %vm607_vm1, %v943_v59, 0.0 }
 0x442   : > { %v927_v34 = vpop.permute.xlu1 %926 }
 0x443   : > { %v981_v35 = vsel %vm607_vm1, %v927_v34, 0.0 }
 0x444   : > { %982 = vadd.xlane.f32.xlu0 %v981_v35 }
 0x446   : > { %v1063_v46 = vpop.permute.xlu0 %1062 }
 0x447   : > { %1107 = vst.msk [vmem:[%s2452_s27 + $0x18] sm:$0xff] %vm607_vm1, %v1063_v46 }
 0x448   : > { %1124 = vst.msk [vmem:[%s2452_s27 + $0x18] sm:$0xff] %vm1120_vm2, %v867_v24 }
 0x449   : > { %1189 = vst.msk [vmem:[%s2452_s27 + $0x18] sm:$0xff] %vm1185_vm3, %v2878_v22 }
 0x44a   : > { %1206 = vst.msk [vmem:[%s2452_s27 + $0x18] sm:$0xff] %vm1202_vm4, %v851_v33 }
 0x44e   : > { %v1087_v42 = vpop.permute.xlu1 %1086  ;;  %v941_v48 = vpop.permute.xlu0 %940 }
 0x44f   : > { %1119 = vst.msk [vmem:[%s2452_s27 + $0x78] sm:$0xff] %vm607_vm1, %v1087_v42  ;;  %v1002_v8 = vsel %vm607_vm1, %v941_v48, 0.0 }
 0x450   : > { %1136 = vst.msk [vmem:[%s2452_s27 + $0x78] sm:$0xff] %vm1120_vm2, %v879_v36  ;;  %1003 = vadd.xlane.f32.xlu2 %v1002_v8 }
 0x456   : > { %v919_v15 = vpop.permute.xlu0 %918 }
 0x457   : > { %v969_v49 = vsel %vm607_vm1, %v919_v15, 0.0 }
 0x458   : > { %1163 = vrot.lane.b32.xlu0 %v1683_v14, %s2851_s25  ;;  %970 = vadd.xlane.f32.xlu1 %v969_v49 }
 0x45e   : > { %v1079_v40 = vpop.permute.xlu0 %1078 }
 0x45f   : > { %1115 = vst.msk [vmem:[%s2452_s27 + $0x58] sm:$0xff] %vm607_vm1, %v1079_v40 }
 0x460   : > { %1132 = vst.msk [vmem:[%s2452_s27 + $0x58] sm:$0xff] %vm1120_vm2, %v875_v4  ;;  %1006 = vadd.xlane.f32.xlu1 %v1005_v54 }
 0x461   : > { %1197 = vst.msk [vmem:[%s2452_s27 + $0x58] sm:$0xff] %vm1185_vm3, %v2880_v11 }
 0x462   : > { %1214 = vst.msk [vmem:[%s2452_s27 + $0x58] sm:$0xff] %vm1202_vm4, %v859_v21 }
 0x466   : > { %v935_v51 = vpop.permute.xlu0 %934 }
 0x467   : > { %v993_v57 = vsel %vm607_vm1, %v935_v51, 0.0 }
 0x468   : > { %994 = vadd.xlane.f32.xlu2 %v993_v57 }
 0x469   : > { %1771 = shalt.err (!%p1768_p10)
}
 0x46a   : > { %s1854_s5 = smov 128   ;;  %s1855_s11 = smov 8   ;;  %vm1219_vm5 = vcmask 64568   ;;  %v2882_v52 = vld [vmem:[#allocation14_spill] sm:$0xff]  ;;  %v2883_v2 = vld [vmem:[#allocation15_spill] sm:$0xff]  ;;  %v2884_v43 = vld [vmem:[#allocation24_spill] sm:$0xff] }
 0x46b   : > { %1523 = dma.vmem_to_hbm [thread:$0]  (%p1950_p3), %s1255_s14, 2048, %s1257_s20, %s1237_s24, %s1854_s5, %s1854_s5, %s1855_s11   ;;  %v861_v37 = vcvt.s32.f32 %v2884_v43  ;;  %v2885_v18 = vld [vmem:[#allocation27_spill] sm:$0xff]  ;;  %v2886_v41 = vld [vmem:[#allocation22_spill] sm:$0xff] }
 0x46c   : > { %s2881_s25 = smov 123   ;;  %v863_v5 = vcvt.s32.f32 %v2885_v18  ;;  %s1270_s14 = scalar_lea.hbm %s2848_s4, %s1491_s28  ;;  %v862_v28 = vcvt.s32.f32 %v2886_v41 }
 0x46d   : > { %s1271_s20 = sshll.u32 %s2452_s27, 4  ;;  %s1273_s24 = sshll.u32 %s1270_s14, 4  ;;  %s1272_s20 = int_to_ptr.vmem [resolvable:$true] %s1271_s20  ;;  %s1274_s24 = int_to_ptr.hbm [resolvable:$true] %s1273_s24 }
 0x46e   : > { %s1242_s19 = scalar_lea.sflag [#allocation9], %s1980_s10  ;;  %s1786_s6 = sshra.s32 %s1274_s24, 4  ;;  %s1787_s6 = int_to_ptr.hbm [resolvable:$true] %s1786_s6 }
 0x46f   : > { %s1788_s7 = scalar_lea.hbm %s1787_s6, 128  ;;  %s1792_s26 = scalar_lea.hbm %s2848_s4, 256 }
 0x470   : > { %p1789_p12 = scmp.ne.s32.totalorder %s1787_s6, %s1788_s7  ;;  %p1793_p5 = scmp.lt.s32.totalorder %s1787_s6, %s2848_s4 }
 0x471   : > { %p1794_p7 = scmp.lt.s32.totalorder %s1792_s26, %s1788_s7 }
 0x472   : > { %p1790_p13 = pnand %p1789_p12, %p1950_p3 }
 0x473   : > { %p1795_p1 = por %p1794_p7, %p1793_p5 }
 0x474   : > { %p1791_p0 = pneg %p1790_p13 }
 0x476   : > { %p1796_p4 = pnand %p1795_p1, %p1791_p0 }
 0x479   : > { %v962_v50 = vpop.xlane.xlu1 %961  ;;  %1165 = vrot.lane.b32.xlu1 %v2882_v52, %s2881_s25 }
 0x47a   : > { %v1008_v3 = vsub.f32 0.0, %v962_v50 }
 0x47c   : > { %1220 = vst.msk [vmem:[%s2452_s27] sm:$0xff] %vm1219_vm5, %v1008_v3 }
 0x480   : > { %1167 = vrot.lane.b32.xlu2 %v2883_v2, %s2881_s25 }
 0x481   : > { %v998_v58 = vpop.xlane.xlu1 %997 }
 0x482   : > { %v1020_v16 = vsub.f32 0.0, %v998_v58 }
 0x484   : > { %1232 = vst.msk [vmem:[%s2452_s27 + $0x60] sm:$0xff] %vm1219_vm5, %v1020_v16 }
 0x489   : > { %v989_v13 = vpop.xlane.xlu1 %988 }
 0x48a   : > { %v1017_v30 = vsub.f32 0.0, %v989_v13 }
 0x48c   : > { %1229 = vst.msk [vmem:[%s2452_s27 + $0x48] sm:$0xff] %vm1219_vm5, %v1017_v30 }
 0x491   : > { %v980_v63 = vpop.xlane.xlu1 %979  ;;  %v974_v29 = vpop.xlane.xlu0 %973 }
 0x492   : > { %v1014_v23 = vsub.f32 0.0, %v980_v63  ;;  %v1012_v27 = vsub.f32 0.0, %v974_v29 }
 0x494   : > { %1226 = vst.msk [vmem:[%s2452_s27 + $0x30] sm:$0xff] %vm1219_vm5, %v1014_v23 }
 0x495   : > { %1224 = vst.msk [vmem:[%s2452_s27 + $0x20] sm:$0xff] %vm1219_vm5, %v1012_v27 }
 0x497   : > { %v986_v17 = vpop.xlane.xlu2 %985 }
 0x498   : > { %v1016_v53 = vsub.f32 0.0, %v986_v17 }
 0x499   : > { %v965_v31 = vpop.xlane.xlu0 %964 }
 0x49a   : > { %1228 = vst.msk [vmem:[%s2452_s27 + $0x40] sm:$0xff] %vm1219_vm5, %v1016_v53  ;;  %v1009_v38 = vsub.f32 0.0, %v965_v31 }
 0x49c   : > { %1221 = vst.msk [vmem:[%s2452_s27 + $0x8] sm:$0xff] %vm1219_vm5, %v1009_v38 }
 0x49f   : > { %v977_v60 = vpop.xlane.xlu2 %976 }
 0x4a0   : > { %v1013_v7 = vsub.f32 0.0, %v977_v60 }
 0x4a2   : > { %1225 = vst.msk [vmem:[%s2452_s27 + $0x28] sm:$0xff] %vm1219_vm5, %v1013_v7 }
 0x4a7   : > { %v968_v32 = vpop.xlane.xlu2 %967  ;;  %v1001_v56 = vpop.xlane.xlu0 %1000 }
 0x4a8   : > { %v1010_v9 = vsub.f32 0.0, %v968_v32  ;;  %v1021_v10 = vsub.f32 0.0, %v1001_v56 }
 0x4aa   : > { %1222 = vst.msk [vmem:[%s2452_s27 + $0x10] sm:$0xff] %vm1219_vm5, %v1010_v9 }
 0x4af   : > { %v992_v6 = vpop.xlane.xlu0 %991 }
 0x4b0   : > { %v1018_v45 = vsub.f32 0.0, %v992_v6 }
 0x4b2   : > { %1230 = vst.msk [vmem:[%s2452_s27 + $0x50] sm:$0xff] %vm1219_vm5, %v1018_v45 }
 0x4b7   : > { %v983_v26 = vpop.xlane.xlu0 %982 }
 0x4b8   : > { %v1015_v12 = vsub.f32 0.0, %v983_v26 }
 0x4ba   : > { %1227 = vst.msk [vmem:[%s2452_s27 + $0x38] sm:$0xff] %vm1219_vm5, %v1015_v12 }
 0x4c3   : > { %v1004_v61 = vpop.xlane.xlu2 %1003 }
 0x4c4   : > { %v1022_v35 = vsub.f32 0.0, %v1004_v61 }
 0x4ca   : > { %v1164_v39 = vpop.permute.xlu0 %1163 }
 0x4cb   : > { %1199 = vst.msk [vmem:[%s2452_s27 + $0x68] sm:$0xff] %vm1185_vm3, %v1164_v39  ;;  %v971_v55 = vpop.xlane.xlu1 %970 }
 0x4cc   : > { %1216 = vst.msk [vmem:[%s2452_s27 + $0x68] sm:$0xff] %vm1202_vm4, %v861_v37  ;;  %v1011_v1 = vsub.f32 0.0, %v971_v55 }
 0x4cd   : > { %1233 = vst.msk [vmem:[%s2452_s27 + $0x68] sm:$0xff] %vm1219_vm5, %v1021_v10 }
 0x4ce   : > { %1223 = vst.msk [vmem:[%s2452_s27 + $0x18] sm:$0xff] %vm1219_vm5, %v1011_v1 }
 0x4d3   : > { %v1007_v20 = vpop.xlane.xlu1 %1006 }
 0x4d4   : > { %v1023_v0 = vsub.f32 0.0, %v1007_v20 }
 0x4db   : > { %v995_v25 = vpop.xlane.xlu2 %994 }
 0x4dc   : > { %v1019_v47 = vsub.f32 0.0, %v995_v25 }
 0x4de   : > { %1231 = vst.msk [vmem:[%s2452_s27 + $0x58] sm:$0xff] %vm1219_vm5, %v1019_v47 }
 0x4e3   : > { %v1168_v62 = vpop.permute.xlu2 %1167 }
 0x4e4   : > { %1201 = vst.msk [vmem:[%s2452_s27 + $0x78] sm:$0xff] %vm1185_vm3, %v1168_v62 }
 0x4e5   : > { %1218 = vst.msk [vmem:[%s2452_s27 + $0x78] sm:$0xff] %vm1202_vm4, %v863_v5 }
 0x4e6   : > { %1235 = vst.msk [vmem:[%s2452_s27 + $0x78] sm:$0xff] %vm1219_vm5, %v1023_v0 }
 0x4eb   : > { %v1166_v34 = vpop.permute.xlu1 %1165 }
 0x4ec   : > { %1200 = vst.msk [vmem:[%s2452_s27 + $0x70] sm:$0xff] %vm1185_vm3, %v1166_v34 }
 0x4ed   : > { %1217 = vst.msk [vmem:[%s2452_s27 + $0x70] sm:$0xff] %vm1202_vm4, %v862_v28 }
 0x4ee   : > { %1234 = vst.msk [vmem:[%s2452_s27 + $0x70] sm:$0xff] %vm1219_vm5, %v1022_v35 }
 0x4ef   : > { %1799 = shalt.err (!%p1796_p4)
}
 0x4f0   : > { %1524 = dma.vmem_to_hbm [thread:$0]  (%p1950_p3), %s1272_s20, 2048, %s1274_s24, %s1242_s19, %s1854_s5, %s1854_s5, %s1855_s11  }
 0x4f1 PF: > { %s1288_s10 = sand.u32 1, %s1834_s15   ;;  %p2887_p8 = scmp.ge.s32.totalorder %s1846_s18, 2 }
 0x4f2   : > { %s1289_s27 = scalar_lea.sflag [#allocation4], %s1288_s10 }
 0x4f3   : > { %p1536_p11 = pnand %p2887_p8, %p1916_p6 }
 0x4f5   : > { %p1537_p9 = pneg %p1536_p11 }
 0x4f7   : > { %1825 = dma.done.wait (%p1537_p9), %s1289_s27, 2048  }
 0x4f8   : > { %1827 = vsyncadd (%p1537_p9), %s1289_s27, 4294965248  ;;  %s1299_s25 = scalar_lea.sflag [#allocation9], %s1288_s10 }
 0x4f9   : > { %1829 = dma.done.wait (%p1537_p9), %s1299_s25, 2048  }
 0x4fa   : > { %1831 = vsyncadd (%p1537_p9), %s1299_s25, 4294965248  ;;  %p22_p3 = scmp.ge.s32.totalorder %s1934_s29, 4   ;;  %s2888_s15 = smov %s1838_s16 }
 0x4fb   : > { %s2889_s16 = smov %s1842_s17  ;;  %s2890_s17 = smov %s1946_s8 }
 0x4fc   : > { %s2891_s18 = smov %s1934_s29  ;;  %24 = sbr.rel (!%p22_p3) target bundleno = 8 (0x8), region = 98 }
 0x501   :  { %1305 = vsyncpa [#allocation3], 1 }
 0x502   :  { %1307 = vsyncpa [#allocation3 + $0x1], 1 }
 0x503   :  { %1308 = vsyncpa [#allocation6], 1 }
 0x504   :  { %1309 = vsyncpa [#allocation4], 1 }
 0x505   :  { %1311 = vsyncpa [#allocation4 + $0x1], 1 }
 0x506   :  { %1312 = vsyncpa [#allocation9], 1 }
 0x507   :  { %1314 = vsyncpa [#allocation9 + $0x1], 1 }

</bundles_post_ra>
